<compile_context>
chip_gen: v7x
topology: tpu7x:2x2x1
jax: 0.10.0
libtpu: 0.0.40
codegen_flags: <defaults>
</compile_context>

<pallas_src>
import functools
import math

import jax
import jax.numpy as jnp
from jax import lax
from jax.experimental import pallas as pl
from jax.experimental.pallas import tpu as pltpu


# ----------------------------- fused decoder-layer kernel ------------------------------

def _decoder_layer_kernel(*refs, num_heads, head_dim, scale, eps, has_prev):
    it = iter(refs)
    x_ref = next(it)            # (B, E)  f32   activation (last token)
    pad_ref = next(it)          # (B, S)  f32   encoder key padding mask (nonzero = pad)
    ek_ref = next(it)           # (B, H, S, Dh) f32 encoder keys
    ev_ref = next(it)           # (B, H, S, Dh) f32 encoder values
    if has_prev:
        psk_ref = next(it)      # (B, H, Tp, Dh) f32 prev self keys
        psv_ref = next(it)      # (B, H, Tp, Dh) f32 prev self values
    w_qkv = next(it); b_qkv = next(it)      # (E,3E) bf16, (1,3E) f32
    w_so = next(it); b_so = next(it)        # (E,E)  bf16, (1,E)  f32
    ln1g = next(it); ln1b = next(it)
    w_eq = next(it); b_eq = next(it)
    w_eo = next(it); b_eo = next(it)
    ln2g = next(it); ln2b = next(it)
    w_f1 = next(it); b_f1 = next(it)        # (E,F) bf16, (1,F) f32
    w_f2 = next(it); b_f2 = next(it)        # (F,E) bf16, (1,E) f32
    ln3g = next(it); ln3b = next(it)
    xo_ref = next(it)           # (B, E) f32  layer output
    nk_ref = next(it)           # (B, E) f32  new self-attn key row (head-merged, lane-dense)
    nv_ref = next(it)           # (B, E) f32  new self-attn value row
    at_ref = next(it)           # (B, S) f32  head-averaged cross-attn probabilities
    qkv_s = next(it)            # scratch (B, 3E) f32
    qe_s = next(it)             # scratch (B, E)  f32
    ctx1_s = next(it)           # scratch (B, E)  f32
    ctx2_s = next(it)           # scratch (B, E)  f32

    B, E = x_ref.shape
    S = pad_ref.shape[1]
    H, Dh = num_heads, head_dim

    def layer_norm(y, g_ref, b_ref):
        m = jnp.mean(y, axis=-1, keepdims=True)
        c = y - m
        v = jnp.mean(c * c, axis=-1, keepdims=True)
        return c * lax.rsqrt(v + eps) * g_ref[...] + b_ref[...]

    def mm(a, w_ref, b_ref=None):
        # bf16 weight streaming, f32 accumulation on the MXU.
        y = jnp.dot(a.astype(jnp.bfloat16), w_ref[...],
                    preferred_element_type=jnp.float32)
        return y if b_ref is None else y + b_ref[...]

    x0 = x_ref[...]

    # ------------------------------ self attention ------------------------------
    qkv_s[...] = mm(x0, w_qkv, b_qkv)                       # fused (E,3E) projection
    nk_ref[...] = qkv_s[:, E:2 * E]                         # new cache row (unscaled)
    nv_ref[...] = qkv_s[:, 2 * E:3 * E]

    for h in range(H):                                      # unrolled; tiny VPU work
        q_h = qkv_s[:, h * Dh:(h + 1) * Dh] * scale         # (B, Dh)
        k_h = qkv_s[:, E + h * Dh:E + (h + 1) * Dh]
        v_h = qkv_s[:, 2 * E + h * Dh:2 * E + (h + 1) * Dh]
        if has_prev:
            pk = psk_ref[:, h]                              # (B, Tp, Dh)
            pv = psv_ref[:, h]
            s_prev = jnp.sum(q_h[:, None, :] * pk, axis=-1)           # (B, Tp)
            s_new = jnp.sum(q_h * k_h, axis=-1, keepdims=True)        # (B, 1)
            m = jnp.maximum(jnp.max(s_prev, axis=-1, keepdims=True), s_new)
            e_prev = jnp.exp(s_prev - m)
            e_new = jnp.exp(s_new - m)
            denom = jnp.sum(e_prev, axis=-1, keepdims=True) + e_new
            inv = pl.reciprocal(denom, approx=True)
            ctx = (jnp.sum(e_prev[:, :, None] * pv, axis=1) + e_new * v_h) * inv
        else:
            # single key (the new token) -> softmax weight is exactly 1
            ctx = v_h
        ctx1_s[:, h * Dh:(h + 1) * Dh] = ctx                # head-merged context

    y = mm(ctx1_s[...], w_so, b_so)                         # one fat out-projection
    x1 = layer_norm(x0 + y, ln1g, ln1b)

    # --------------------------- encoder (cross) attention ---------------------------
    qe_s[...] = mm(x1, w_eq, b_eq)                          # (B, E)
    neg = jnp.where(pad_ref[...] != 0.0,
                    jnp.float32(-1e30), jnp.float32(0.0))   # (B, S) additive mask
    attn_sum = jnp.zeros((B, S), jnp.float32)
    for h in range(H):
        q_h = qe_s[:, h * Dh:(h + 1) * Dh] * scale          # (B, Dh)
        ek = ek_ref[:, h]                                   # (B, S, Dh)
        ev = ev_ref[:, h]
        s = jnp.sum(q_h[:, None, :] * ek, axis=-1) + neg    # (B, S)
        s = s - jnp.max(s, axis=-1, keepdims=True)
        e = jnp.exp(s)
        p = e * pl.reciprocal(jnp.sum(e, axis=-1, keepdims=True), approx=True)
        attn_sum = attn_sum + p
        ctx = jnp.sum(p[:, :, None] * ev, axis=1)           # (B, Dh)
        ctx2_s[:, h * Dh:(h + 1) * Dh] = ctx
    at_ref[...] = attn_sum * (1.0 / H)                      # head-averaged, in-kernel

    y = mm(ctx2_s[...], w_eo, b_eo)
    x2 = layer_norm(x1 + y, ln2g, ln2b)

    # --------------------------------- feed forward ---------------------------------
    h1 = jnp.maximum(mm(x2, w_f1, b_f1), 0.0)               # (B, F)
    y = mm(h1, w_f2, b_f2)
    xo_ref[...] = layer_norm(x2 + y, ln3g, ln3b)


def decoder_layer(x, p, enc_k, enc_v, enc_pad, prev_sk, prev_sv, *, num_heads, head_dim):
    B, E = x.shape
    S = enc_pad.shape[1]
    has_prev = prev_sk is not None
    inputs = [x, enc_pad, enc_k, enc_v]
    if has_prev:
        inputs += [prev_sk, prev_sv]
    inputs += [p["w_qkv"], p["b_qkv"], p["w_so"], p["b_so"], p["ln1_g"], p["ln1_b"],
               p["w_eq"], p["b_eq"], p["w_eo"], p["b_eo"], p["ln2_g"], p["ln2_b"],
               p["w_fc1"], p["b_fc1"], p["w_fc2"], p["b_fc2"], p["ln3_g"], p["ln3_b"]]
    kernel = functools.partial(
        _decoder_layer_kernel, num_heads=num_heads, head_dim=head_dim,
        scale=head_dim ** -0.5, eps=1e-5, has_prev=has_prev)
    out = pl.pallas_call(
        kernel,
        out_shape=[jax.ShapeDtypeStruct((B, E), jnp.float32),   # x_out
                   jax.ShapeDtypeStruct((B, E), jnp.float32),   # new self key row
                   jax.ShapeDtypeStruct((B, E), jnp.float32),   # new self value row
                   jax.ShapeDtypeStruct((B, S), jnp.float32)],  # head-avg cross-attn probs
        scratch_shapes=[pltpu.VMEM((B, 3 * E), jnp.float32),
                        pltpu.VMEM((B, E), jnp.float32),
                        pltpu.VMEM((B, E), jnp.float32),
                        pltpu.VMEM((B, E), jnp.float32)],
    )(*inputs)
    return out


# --------------------------- auxiliary projection kernels ---------------------------

def _kv_proj_kernel(x_ref, w_ref, b_ref, o_ref):
    o_ref[...] = (jnp.dot(x_ref[...].astype(jnp.bfloat16), w_ref[...],
                          preferred_element_type=jnp.float32) + b_ref[...])


def encoder_kv_projection(x2d, w_ekv, b_ekv):
    """x2d: (B*S, E) f32, w_ekv: (E, 2E) bf16 -> (B*S, 2E) f32 (K cols then V cols)."""
    M = x2d.shape[0]
    N = w_ekv.shape[1]
    return pl.pallas_call(
        _kv_proj_kernel,
        out_shape=jax.ShapeDtypeStruct((M, N), jnp.float32),
    )(x2d, w_ekv, b_ekv)


def _out_proj_kernel(x_ref, w_ref, o_ref):
    o_ref[...] = jnp.dot(x_ref[...].astype(jnp.bfloat16), w_ref[...],
                         preferred_element_type=jnp.float32)


def output_projection(x, w_out, tile_n=256):
    """Tied output projection: x (B, E) f32 @ w_out (E, V) bf16 -> (B, V) f32.
    Tiled over the vocab with lane-dense blocks; no bias."""
    B, E = x.shape
    V = w_out.shape[1]
    if V % tile_n != 0:
        tile_n = V
    grid = (V // tile_n,)
    return pl.pallas_call(
        _out_proj_kernel,
        grid=grid,
        in_specs=[pl.BlockSpec((B, E), lambda j: (0, 0)),
                  pl.BlockSpec((E, tile_n), lambda j: (0, j))],
        out_specs=pl.BlockSpec((B, tile_n), lambda j: (0, j)),
        out_shape=jax.ShapeDtypeStruct((B, V), jnp.float32),
        compiler_params=pltpu.CompilerParams(dimension_semantics=("parallel",)),
    )(x, w_out)


# ------------------------------------ parameters ------------------------------------

def init_decoder_params(key, num_layers, embed_dim, ffn_dim, vocab):
    # TODO(synk): the real WrappedDecoder loads fairseq checkpoint weights
    # ('wmt14.en-fr.joined-dict.transformer'); deterministic synthetic weights stand in.
    E, F = embed_dim, ffn_dim

    def dense(k, fi, fo):
        return (jax.random.normal(k, (fi, fo), jnp.float32) * 0.02).astype(jnp.bfloat16)

    def zrow(n):
        return jnp.zeros((1, n), jnp.float32)

    def orow(n):
        return jnp.ones((1, n), jnp.float32)

    keys = jax.random.split(key, num_layers + 1)
    embed = jax.random.normal(keys[0], (vocab, E), jnp.float32) * 0.02
    params = {
        "embed": embed,                                   # (V, E) f32, token lookup
        "w_out": embed.T.astype(jnp.bfloat16),            # pre-transposed tied projection
        "layers": [],
    }
    for li in range(num_layers):
        lk = jax.random.split(keys[li + 1], 10)
        params["layers"].append({
            # fused QKV projection (q | k | v columns)
            "w_qkv": jnp.concatenate([dense(lk[0], E, E), dense(lk[1], E, E),
                                      dense(lk[2], E, E)], axis=1),
            "b_qkv": zrow(3 * E),
            "w_so": dense(lk[3], E, E), "b_so": zrow(E),
            "ln1_g": orow(E), "ln1_b": zrow(E),
            "w_eq": dense(lk[4], E, E), "b_eq": zrow(E),
            # fused encoder K/V projection (k | v columns) -- first decode step only
            "w_ekv": jnp.concatenate([dense(lk[5], E, E), dense(lk[6], E, E)], axis=1),
            "b_ekv": zrow(2 * E),
            "w_eo": dense(lk[7], E, E), "b_eo": zrow(E),
            "ln2_g": orow(E), "ln2_b": zrow(E),
            "w_fc1": dense(lk[8], E, F), "b_fc1": zrow(F),
            "w_fc2": dense(lk[9], F, E), "b_fc2": zrow(E),
            "ln3_g": orow(E), "ln3_b": zrow(E),
        })
    return params


# ------------------------------------ forward pass ------------------------------------

def wrapped_decoder_forward(params, cfg, prev_output_tokens, encoder_out,
                            encoder_padding_mask, incremental_self_attn_states,
                            incremental_encoder_attn_states,
                            incremental_encoder_prev_padding_mask):
    B, T = prev_output_tokens.shape
    S = encoder_out.shape[1]
    E, H, Dh, L = cfg["embed_dim"], cfg["num_heads"], cfg["head_dim"], cfg["num_layers"]
    padding_idx = cfg["padding_idx"]
    use_incremental = T > 1                 # mirrors `prev_output_tokens.shape[1] > 1`

    # fairseq incremental decoding: only the last token goes through the decoder.
    tokens = prev_output_tokens[:, -1]                                  # (B,)
    half = E // 2
    inv_freq = jnp.exp(jnp.arange(half, dtype=jnp.float32)
                       * (-math.log(10000.0) / (half - 1)))
    posv = jnp.float32(padding_idx + T)
    pos_row = jnp.concatenate([jnp.sin(posv * inv_freq), jnp.cos(posv * inv_freq)])
    x = math.sqrt(E) * params["embed"][tokens] + pos_row[None, :]       # (B, E)

    has_prev_self = use_incremental and incremental_self_attn_states.shape[4] > 0
    has_prev_enc = use_incremental and incremental_encoder_attn_states.shape[4] > 0
    has_prev_pad = use_incremental and incremental_encoder_prev_padding_mask.shape[2] > 0
    enc_pad_f32 = encoder_padding_mask.astype(jnp.float32)

    new_k_rows, new_v_rows = [], []
    enc_k_list, enc_v_list = [], []
    attn_avg = None

    for li in range(L):
        p = params["layers"][li]

        if has_prev_enc:
            enc_k = incremental_encoder_attn_states[:, 0, li]           # (B, H, S, Dh)
            enc_v = incremental_encoder_attn_states[:, 1, li]
        else:
            kv = encoder_kv_projection(encoder_out.reshape(B * S, E),
                                       p["w_ekv"], p["b_ekv"])          # (B*S, 2E)
            kv = kv.reshape(B, S, 2, H, Dh).transpose(2, 0, 3, 1, 4)    # (2, B, H, S, Dh)
            enc_k, enc_v = kv[0], kv[1]
            enc_k_list.append(enc_k)
            enc_v_list.append(enc_v)

        pad = (incremental_encoder_prev_padding_mask[:, li].astype(jnp.float32)
               if has_prev_pad else enc_pad_f32)                        # (B, S)

        if has_prev_self:
            prev_sk = incremental_self_attn_states[:, 0, li]            # (B, H, Tp, Dh)
            prev_sv = incremental_self_attn_states[:, 1, li]
        else:
            prev_sk = prev_sv = None

        x, new_k, new_v, attn_avg = decoder_layer(
            x, p, enc_k, enc_v, pad, prev_sk, prev_sv,
            num_heads=H, head_dim=Dh)
        new_k_rows.append(new_k.reshape(B, H, 1, Dh))
        new_v_rows.append(new_v.reshape(B, H, 1, Dh))

    # tied output projection (bf16, pre-transposed, vocab-tiled, no bias)
    logits = output_projection(x, params["w_out"]).reshape(B, 1, -1)
    attn = attn_avg.reshape(B, 1, S)                                    # last layer, head-avg

    # ---------- incremental-state outputs (module semantics, no redundant copies) ----------
    k_all = jnp.stack(new_k_rows, axis=0)                               # (L, B, H, 1, Dh)
    v_all = jnp.stack(new_v_rows, axis=0)
    last_token_prev_self_kv = jnp.stack([k_all, v_all], axis=1).swapaxes(0, 2)  # (B,2,L,H,1,Dh)

    if has_prev_enc:
        prev_encoder_kv = incremental_encoder_attn_states               # unchanged: pass through
    else:
        ek = jnp.stack(enc_k_list, axis=0)                              # (L, B, H, S, Dh)
        ev = jnp.stack(enc_v_list, axis=0)
        prev_encoder_kv = jnp.stack([ek, ev], axis=1).swapaxes(0, 2)    # (B, 2, L, H, S, Dh)

    if has_prev_pad:
        prev_encoder_padding_masks = incremental_encoder_prev_padding_mask.astype(jnp.float32)
    else:
        prev_encoder_padding_masks = jnp.broadcast_to(
            enc_pad_f32[:, None, :], (B, L, S)).astype(jnp.float32)

    return (logits, attn, last_token_prev_self_kv, prev_encoder_kv,
            prev_encoder_padding_masks)


# ---------------------------------------- main ----------------------------------------

if __name__ == "__main__":
    # small shapes mirroring the module's state layout (B, 2, L, H, T, Dh)
    B, L, H, Dh, FFN, V, S, T = 2, 2, 4, 8, 64, 512, 8, 3
    E = H * Dh
    Tp = T - 1
    cfg = dict(embed_dim=E, num_heads=H, head_dim=Dh, num_layers=L, padding_idx=1)

    key = jax.random.PRNGKey(0)
    kp, k1, k2, k3, k4 = jax.random.split(key, 5)
    params = init_decoder_params(kp, L, E, FFN, V)

    prev_output_tokens = jax.random.randint(k1, (B, T), 2, V).astype(jnp.int32)
    encoder_out = jax.random.normal(k2, (B, S, E), jnp.float32)
    encoder_padding_mask = jnp.zeros((B, S), jnp.float32)
    incremental_self_attn_states = jax.random.normal(k3, (B, 2, L, H, Tp, Dh), jnp.float32)
    incremental_encoder_attn_states = jax.random.normal(k4, (B, 2, L, H, S, Dh), jnp.float32)
    incremental_encoder_prev_padding_mask = jnp.zeros((B, L, S), jnp.float32)

    @jax.jit
    def step(tokens, enc_out, enc_pad, self_state, enc_state, enc_prev_pad):
        return wrapped_decoder_forward(params, cfg, tokens, enc_out, enc_pad,
                                       self_state, enc_state, enc_prev_pad)

    # incremental decode step (cached self/encoder KV states are used)
    outs = step(prev_output_tokens, encoder_out, encoder_padding_mask,
                incremental_self_attn_states, incremental_encoder_attn_states,
                incremental_encoder_prev_padding_mask)
    outs = jax.block_until_ready(outs)
    logits, attn, self_kv, enc_kv, enc_pad = outs
    assert logits.shape == (B, 1, V)
    assert attn.shape == (B, 1, S)
    assert self_kv.shape == (B, 2, L, H, 1, Dh)
    assert enc_kv.shape == (B, 2, L, H, S, Dh)
    assert enc_pad.shape == (B, L, S)
    assert all(bool(jnp.all(jnp.isfinite(o))) for o in (logits, attn, self_kv, enc_kv, enc_pad))

    # first decode step (T == 1): no incremental state is consumed, encoder K/V computed fresh
    outs1 = step(prev_output_tokens[:, :1], encoder_out, encoder_padding_mask,
                 incremental_self_attn_states, incremental_encoder_attn_states,
                 incremental_encoder_prev_padding_mask)
    outs1 = jax.block_until_ready(outs1)
    logits1, attn1, self_kv1, enc_kv1, enc_pad1 = outs1
    assert logits1.shape == (B, 1, V)
    assert attn1.shape == (B, 1, S)
    assert self_kv1.shape == (B, 2, L, H, 1, Dh)
    assert enc_kv1.shape == (B, 2, L, H, S, Dh)
    assert enc_pad1.shape == (B, L, S)
    assert all(bool(jnp.all(jnp.isfinite(o)))
               for o in (logits1, attn1, self_kv1, enc_kv1, enc_pad1))

    print("KERNEL_OK")
</pallas_src>

<mosaic_0001>
module attributes {stable_mosaic.version = 11 : i64} {
  func.func @_decoder_layer_kernel(%arg0: memref<2x32xf32, #tpu.memory_space<vmem>>, %arg1: memref<2x8xf32, #tpu.memory_space<vmem>>, %arg2: memref<2x4x8x8xf32, #tpu.memory_space<vmem>>, %arg3: memref<2x4x8x8xf32, #tpu.memory_space<vmem>>, %arg4: memref<2x4x2x8xf32, #tpu.memory_space<vmem>>, %arg5: memref<2x4x2x8xf32, #tpu.memory_space<vmem>>, %arg6: memref<32x96xbf16, #tpu.memory_space<vmem>>, %arg7: memref<1x96xf32, #tpu.memory_space<vmem>>, %arg8: memref<32x32xbf16, #tpu.memory_space<vmem>>, %arg9: memref<1x32xf32, #tpu.memory_space<vmem>>, %arg10: memref<1x32xf32, #tpu.memory_space<vmem>>, %arg11: memref<1x32xf32, #tpu.memory_space<vmem>>, %arg12: memref<32x32xbf16, #tpu.memory_space<vmem>>, %arg13: memref<1x32xf32, #tpu.memory_space<vmem>>, %arg14: memref<32x32xbf16, #tpu.memory_space<vmem>>, %arg15: memref<1x32xf32, #tpu.memory_space<vmem>>, %arg16: memref<1x32xf32, #tpu.memory_space<vmem>>, %arg17: memref<1x32xf32, #tpu.memory_space<vmem>>, %arg18: memref<32x64xbf16, #tpu.memory_space<vmem>>, %arg19: memref<1x64xf32, #tpu.memory_space<vmem>>, %arg20: memref<64x32xbf16, #tpu.memory_space<vmem>>, %arg21: memref<1x32xf32, #tpu.memory_space<vmem>>, %arg22: memref<1x32xf32, #tpu.memory_space<vmem>>, %arg23: memref<1x32xf32, #tpu.memory_space<vmem>>, %arg24: memref<2x32xf32, #tpu.memory_space<vmem>>, %arg25: memref<2x32xf32, #tpu.memory_space<vmem>>, %arg26: memref<2x32xf32, #tpu.memory_space<vmem>>, %arg27: memref<2x8xf32, #tpu.memory_space<vmem>>, %arg28: memref<2x96xf32, #tpu.memory_space<vmem>>, %arg29: memref<2x32xf32, #tpu.memory_space<vmem>>, %arg30: memref<2x32xf32, #tpu.memory_space<vmem>>, %arg31: memref<2x32xf32, #tpu.memory_space<vmem>>) attributes {dimension_semantics = [], scalar_prefetch = 0 : i64, scratch_operands = 4 : i64, tpu.core_type = #tpu.core_type<tc>} {
    %c0 = arith.constant 0 : index
    %c0_0 = arith.constant 0 : index
    %0 = vector.load %arg0[%c0, %c0_0] : memref<2x32xf32, #tpu.memory_space<vmem>>, vector<2x32xf32>
    %1 = arith.truncf %0 : vector<2x32xf32> to vector<2x32xbf16>
    %c0_1 = arith.constant 0 : index
    %c0_2 = arith.constant 0 : index
    %2 = vector.load %arg6[%c0_1, %c0_2] : memref<32x96xbf16, #tpu.memory_space<vmem>>, vector<32x96xbf16>
    %cst = arith.constant dense<0.000000e+00> : vector<2x96xf32>
    %3 = tpu.matmul %1, %2, %cst {dimension_numbers = #tpu.dot_dimension_numbers<[1], [0], [0], [1], [0, 0, 1, 1], [], []>} : vector<2x32xbf16>, vector<32x96xbf16>, vector<2x96xf32> -> vector<2x96xf32>
    %c0_3 = arith.constant 0 : index
    %c0_4 = arith.constant 0 : index
    %4 = vector.load %arg7[%c0_3, %c0_4] : memref<1x96xf32, #tpu.memory_space<vmem>>, vector<1x96xf32>
    %5 = vector.broadcast %4 : vector<1x96xf32> to vector<2x96xf32>
    %6 = arith.addf %3, %5 : vector<2x96xf32>
    %c0_5 = arith.constant 0 : index
    %c0_6 = arith.constant 0 : index
    %7 = vector.load %arg28[%c0_5, %c0_6] : memref<2x96xf32, #tpu.memory_space<vmem>>, vector<2x96xf32>
    tpu.vector_store %arg28[%c0_5, %c0_6], %6 {strides = array<i32>} : memref<2x96xf32, #tpu.memory_space<vmem>>, vector<2x96xf32>,
    %c0_7 = arith.constant 0 : index
    %c32 = arith.constant 32 : index
    %8 = vector.load %arg28[%c0_7, %c32] : memref<2x96xf32, #tpu.memory_space<vmem>>, vector<2x32xf32>
    %c0_8 = arith.constant 0 : index
    %c0_9 = arith.constant 0 : index
    %9 = vector.load %arg25[%c0_8, %c0_9] : memref<2x32xf32, #tpu.memory_space<vmem>>, vector<2x32xf32>
    tpu.vector_store %arg25[%c0_8, %c0_9], %8 {strides = array<i32>} : memref<2x32xf32, #tpu.memory_space<vmem>>, vector<2x32xf32>,
    %c0_10 = arith.constant 0 : index
    %c64 = arith.constant 64 : index
    %10 = vector.load %arg28[%c0_10, %c64] : memref<2x96xf32, #tpu.memory_space<vmem>>, vector<2x32xf32>
    %c0_11 = arith.constant 0 : index
    %c0_12 = arith.constant 0 : index
    %11 = vector.load %arg26[%c0_11, %c0_12] : memref<2x32xf32, #tpu.memory_space<vmem>>, vector<2x32xf32>
    tpu.vector_store %arg26[%c0_11, %c0_12], %10 {strides = array<i32>} : memref<2x32xf32, #tpu.memory_space<vmem>>, vector<2x32xf32>,
    %c0_13 = arith.constant 0 : index
    %c0_14 = arith.constant 0 : index
    %12 = vector.load %arg28[%c0_13, %c0_14] : memref<2x96xf32, #tpu.memory_space<vmem>>, vector<2x8xf32>
    %cst_15 = arith.constant 0.353553385 : f32
    %13 = vector.broadcast %cst_15 : f32 to vector<2x8xf32>
    %14 = arith.mulf %12, %13 : vector<2x8xf32>
    %c0_16 = arith.constant 0 : index
    %c32_17 = arith.constant 32 : index
    %15 = vector.load %arg28[%c0_16, %c32_17] : memref<2x96xf32, #tpu.memory_space<vmem>>, vector<2x8xf32>
    %c0_18 = arith.constant 0 : index
    %c64_19 = arith.constant 64 : index
    %16 = vector.load %arg28[%c0_18, %c64_19] : memref<2x96xf32, #tpu.memory_space<vmem>>, vector<2x8xf32>
    %c0_20 = arith.constant 0 : index
    %c0_21 = arith.constant 0 : index
    %c0_22 = arith.constant 0 : index
    %c0_23 = arith.constant 0 : index
    %17 = vector.load %arg4[%c0_20, %c0_21, %c0_22, %c0_23] : memref<2x4x2x8xf32, #tpu.memory_space<vmem>>, vector<2x1x2x8xf32>
    %18 = vector.shape_cast %17 : vector<2x1x2x8xf32> to vector<2x2x8xf32>
    %c0_24 = arith.constant 0 : index
    %c0_25 = arith.constant 0 : index
    %c0_26 = arith.constant 0 : index
    %c0_27 = arith.constant 0 : index
    %19 = vector.load %arg5[%c0_24, %c0_25, %c0_26, %c0_27] : memref<2x4x2x8xf32, #tpu.memory_space<vmem>>, vector<2x1x2x8xf32>
    %20 = vector.shape_cast %19 : vector<2x1x2x8xf32> to vector<2x2x8xf32>
    %21 = vector.shape_cast %14 : vector<2x8xf32> to vector<2x1x8xf32>
    %22 = vector.broadcast %21 : vector<2x1x8xf32> to vector<2x2x8xf32>
    %23 = arith.mulf %22, %18 : vector<2x2x8xf32>
    %cst_28 = arith.constant dense<0.000000e+00> : vector<2x2xf32>
    %24 = vector.multi_reduction <add>, %23, %cst_28 [2] : vector<2x2x8xf32> to vector<2x2xf32>
    %25 = arith.mulf %14, %15 : vector<2x8xf32>
    %cst_29 = arith.constant dense<0.000000e+00> : vector<2xf32>
    %26 = vector.multi_reduction <add>, %25, %cst_29 [1] : vector<2x8xf32> to vector<2xf32>
    %27 = vector.shape_cast %26 : vector<2xf32> to vector<2x1xf32>
    %cst_30 = arith.constant dense<0xFF800000> : vector<2xf32>
    %28 = vector.multi_reduction <maximumf>, %24, %cst_30 [1] : vector<2x2xf32> to vector<2xf32>
    %29 = vector.shape_cast %28 : vector<2xf32> to vector<2x1xf32>
    %30 = arith.maximumf %29, %27 : vector<2x1xf32>
    %31 = vector.broadcast %30 : vector<2x1xf32> to vector<2x2xf32>
    %32 = arith.subf %24, %31 : vector<2x2xf32>
    %33 = math.exp %32 : vector<2x2xf32>
    %34 = arith.subf %27, %30 : vector<2x1xf32>
    %35 = math.exp %34 : vector<2x1xf32>
    %cst_31 = arith.constant dense<0.000000e+00> : vector<2xf32>
    %36 = vector.multi_reduction <add>, %33, %cst_31 [1] : vector<2x2xf32> to vector<2xf32>
    %37 = vector.shape_cast %36 : vector<2xf32> to vector<2x1xf32>
    %38 = arith.addf %37, %35 : vector<2x1xf32>
    %39 = tpu.reciprocal %38 {approx = true} : vector<2x1xf32> -> vector<2x1xf32>
    %40 = vector.shape_cast %33 : vector<2x2xf32> to vector<2x2x1xf32>
    %41 = vector.broadcast %40 : vector<2x2x1xf32> to vector<2x2x8xf32>
    %42 = arith.mulf %41, %20 : vector<2x2x8xf32>
    %cst_32 = arith.constant dense<0.000000e+00> : vector<2x8xf32>
    %43 = vector.multi_reduction <add>, %42, %cst_32 [1] : vector<2x2x8xf32> to vector<2x8xf32>
    %44 = vector.broadcast %35 : vector<2x1xf32> to vector<2x8xf32>
    %45 = arith.mulf %44, %16 : vector<2x8xf32>
    %46 = arith.addf %43, %45 : vector<2x8xf32>
    %47 = vector.broadcast %39 : vector<2x1xf32> to vector<2x8xf32>
    %48 = arith.mulf %46, %47 : vector<2x8xf32>
    %c0_33 = arith.constant 0 : index
    %c0_34 = arith.constant 0 : index
    %49 = vector.load %arg30[%c0_33, %c0_34] : memref<2x32xf32, #tpu.memory_space<vmem>>, vector<2x8xf32>
    tpu.vector_store %arg30[%c0_33, %c0_34], %48 {strides = array<i32>} : memref<2x32xf32, #tpu.memory_space<vmem>>, vector<2x8xf32>,
    %c0_35 = arith.constant 0 : index
    %c8 = arith.constant 8 : index
    %50 = vector.load %arg28[%c0_35, %c8] : memref<2x96xf32, #tpu.memory_space<vmem>>, vector<2x8xf32>
    %cst_36 = arith.constant 0.353553385 : f32
    %51 = vector.broadcast %cst_36 : f32 to vector<2x8xf32>
    %52 = arith.mulf %50, %51 : vector<2x8xf32>
    %c0_37 = arith.constant 0 : index
    %c40 = arith.constant 40 : index
    %53 = vector.load %arg28[%c0_37, %c40] : memref<2x96xf32, #tpu.memory_space<vmem>>, vector<2x8xf32>
    %c0_38 = arith.constant 0 : index
    %c72 = arith.constant 72 : index
    %54 = vector.load %arg28[%c0_38, %c72] : memref<2x96xf32, #tpu.memory_space<vmem>>, vector<2x8xf32>
    %c0_39 = arith.constant 0 : index
    %c1 = arith.constant 1 : index
    %c0_40 = arith.constant 0 : index
    %c0_41 = arith.constant 0 : index
    %55 = vector.load %arg4[%c0_39, %c1, %c0_40, %c0_41] : memref<2x4x2x8xf32, #tpu.memory_space<vmem>>, vector<2x1x2x8xf32>
    %56 = vector.shape_cast %55 : vector<2x1x2x8xf32> to vector<2x2x8xf32>
    %c0_42 = arith.constant 0 : index
    %c1_43 = arith.constant 1 : index
    %c0_44 = arith.constant 0 : index
    %c0_45 = arith.constant 0 : index
    %57 = vector.load %arg5[%c0_42, %c1_43, %c0_44, %c0_45] : memref<2x4x2x8xf32, #tpu.memory_space<vmem>>, vector<2x1x2x8xf32>
    %58 = vector.shape_cast %57 : vector<2x1x2x8xf32> to vector<2x2x8xf32>
    %59 = vector.shape_cast %52 : vector<2x8xf32> to vector<2x1x8xf32>
    %60 = vector.broadcast %59 : vector<2x1x8xf32> to vector<2x2x8xf32>
    %61 = arith.mulf %60, %56 : vector<2x2x8xf32>
    %cst_46 = arith.constant dense<0.000000e+00> : vector<2x2xf32>
    %62 = vector.multi_reduction <add>, %61, %cst_46 [2] : vector<2x2x8xf32> to vector<2x2xf32>
    %63 = arith.mulf %52, %53 : vector<2x8xf32>
    %cst_47 = arith.constant dense<0.000000e+00> : vector<2xf32>
    %64 = vector.multi_reduction <add>, %63, %cst_47 [1] : vector<2x8xf32> to vector<2xf32>
    %65 = vector.shape_cast %64 : vector<2xf32> to vector<2x1xf32>
    %cst_48 = arith.constant dense<0xFF800000> : vector<2xf32>
    %66 = vector.multi_reduction <maximumf>, %62, %cst_48 [1] : vector<2x2xf32> to vector<2xf32>
    %67 = vector.shape_cast %66 : vector<2xf32> to vector<2x1xf32>
    %68 = arith.maximumf %67, %65 : vector<2x1xf32>
    %69 = vector.broadcast %68 : vector<2x1xf32> to vector<2x2xf32>
    %70 = arith.subf %62, %69 : vector<2x2xf32>
    %71 = math.exp %70 : vector<2x2xf32>
    %72 = arith.subf %65, %68 : vector<2x1xf32>
    %73 = math.exp %72 : vector<2x1xf32>
    %cst_49 = arith.constant dense<0.000000e+00> : vector<2xf32>
    %74 = vector.multi_reduction <add>, %71, %cst_49 [1] : vector<2x2xf32> to vector<2xf32>
    %75 = vector.shape_cast %74 : vector<2xf32> to vector<2x1xf32>
    %76 = arith.addf %75, %73 : vector<2x1xf32>
    %77 = tpu.reciprocal %76 {approx = true} : vector<2x1xf32> -> vector<2x1xf32>
    %78 = vector.shape_cast %71 : vector<2x2xf32> to vector<2x2x1xf32>
    %79 = vector.broadcast %78 : vector<2x2x1xf32> to vector<2x2x8xf32>
    %80 = arith.mulf %79, %58 : vector<2x2x8xf32>
    %cst_50 = arith.constant dense<0.000000e+00> : vector<2x8xf32>
    %81 = vector.multi_reduction <add>, %80, %cst_50 [1] : vector<2x2x8xf32> to vector<2x8xf32>
    %82 = vector.broadcast %73 : vector<2x1xf32> to vector<2x8xf32>
    %83 = arith.mulf %82, %54 : vector<2x8xf32>
    %84 = arith.addf %81, %83 : vector<2x8xf32>
    %85 = vector.broadcast %77 : vector<2x1xf32> to vector<2x8xf32>
    %86 = arith.mulf %84, %85 : vector<2x8xf32>
    %c0_51 = arith.constant 0 : index
    %c8_52 = arith.constant 8 : index
    %87 = vector.load %arg30[%c0_51, %c8_52] : memref<2x32xf32, #tpu.memory_space<vmem>>, vector<2x8xf32>
    tpu.vector_store %arg30[%c0_51, %c8_52], %86 {strides = array<i32>} : memref<2x32xf32, #tpu.memory_space<vmem>>, vector<2x8xf32>,
    %c0_53 = arith.constant 0 : index
    %c16 = arith.constant 16 : index
    %88 = vector.load %arg28[%c0_53, %c16] : memref<2x96xf32, #tpu.memory_space<vmem>>, vector<2x8xf32>
    %cst_54 = arith.constant 0.353553385 : f32
    %89 = vector.broadcast %cst_54 : f32 to vector<2x8xf32>
    %90 = arith.mulf %88, %89 : vector<2x8xf32>
    %c0_55 = arith.constant 0 : index
    %c48 = arith.constant 48 : index
    %91 = vector.load %arg28[%c0_55, %c48] : memref<2x96xf32, #tpu.memory_space<vmem>>, vector<2x8xf32>
    %c0_56 = arith.constant 0 : index
    %c80 = arith.constant 80 : index
    %92 = vector.load %arg28[%c0_56, %c80] : memref<2x96xf32, #tpu.memory_space<vmem>>, vector<2x8xf32>
    %c0_57 = arith.constant 0 : index
    %c2 = arith.constant 2 : index
    %c0_58 = arith.constant 0 : index
    %c0_59 = arith.constant 0 : index
    %93 = vector.load %arg4[%c0_57, %c2, %c0_58, %c0_59] : memref<2x4x2x8xf32, #tpu.memory_space<vmem>>, vector<2x1x2x8xf32>
    %94 = vector.shape_cast %93 : vector<2x1x2x8xf32> to vector<2x2x8xf32>
    %c0_60 = arith.constant 0 : index
    %c2_61 = arith.constant 2 : index
    %c0_62 = arith.constant 0 : index
    %c0_63 = arith.constant 0 : index
    %95 = vector.load %arg5[%c0_60, %c2_61, %c0_62, %c0_63] : memref<2x4x2x8xf32, #tpu.memory_space<vmem>>, vector<2x1x2x8xf32>
    %96 = vector.shape_cast %95 : vector<2x1x2x8xf32> to vector<2x2x8xf32>
    %97 = vector.shape_cast %90 : vector<2x8xf32> to vector<2x1x8xf32>
    %98 = vector.broadcast %97 : vector<2x1x8xf32> to vector<2x2x8xf32>
    %99 = arith.mulf %98, %94 : vector<2x2x8xf32>
    %cst_64 = arith.constant dense<0.000000e+00> : vector<2x2xf32>
    %100 = vector.multi_reduction <add>, %99, %cst_64 [2] : vector<2x2x8xf32> to vector<2x2xf32>
    %101 = arith.mulf %90, %91 : vector<2x8xf32>
    %cst_65 = arith.constant dense<0.000000e+00> : vector<2xf32>
    %102 = vector.multi_reduction <add>, %101, %cst_65 [1] : vector<2x8xf32> to vector<2xf32>
    %103 = vector.shape_cast %102 : vector<2xf32> to vector<2x1xf32>
    %cst_66 = arith.constant dense<0xFF800000> : vector<2xf32>
    %104 = vector.multi_reduction <maximumf>, %100, %cst_66 [1] : vector<2x2xf32> to vector<2xf32>
    %105 = vector.shape_cast %104 : vector<2xf32> to vector<2x1xf32>
    %106 = arith.maximumf %105, %103 : vector<2x1xf32>
    %107 = vector.broadcast %106 : vector<2x1xf32> to vector<2x2xf32>
    %108 = arith.subf %100, %107 : vector<2x2xf32>
    %109 = math.exp %108 : vector<2x2xf32>
    %110 = arith.subf %103, %106 : vector<2x1xf32>
    %111 = math.exp %110 : vector<2x1xf32>
    %cst_67 = arith.constant dense<0.000000e+00> : vector<2xf32>
    %112 = vector.multi_reduction <add>, %109, %cst_67 [1] : vector<2x2xf32> to vector<2xf32>
    %113 = vector.shape_cast %112 : vector<2xf32> to vector<2x1xf32>
    %114 = arith.addf %113, %111 : vector<2x1xf32>
    %115 = tpu.reciprocal %114 {approx = true} : vector<2x1xf32> -> vector<2x1xf32>
    %116 = vector.shape_cast %109 : vector<2x2xf32> to vector<2x2x1xf32>
    %117 = vector.broadcast %116 : vector<2x2x1xf32> to vector<2x2x8xf32>
    %118 = arith.mulf %117, %96 : vector<2x2x8xf32>
    %cst_68 = arith.constant dense<0.000000e+00> : vector<2x8xf32>
    %119 = vector.multi_reduction <add>, %118, %cst_68 [1] : vector<2x2x8xf32> to vector<2x8xf32>
    %120 = vector.broadcast %111 : vector<2x1xf32> to vector<2x8xf32>
    %121 = arith.mulf %120, %92 : vector<2x8xf32>
    %122 = arith.addf %119, %121 : vector<2x8xf32>
    %123 = vector.broadcast %115 : vector<2x1xf32> to vector<2x8xf32>
    %124 = arith.mulf %122, %123 : vector<2x8xf32>
    %c0_69 = arith.constant 0 : index
    %c16_70 = arith.constant 16 : index
    %125 = vector.load %arg30[%c0_69, %c16_70] : memref<2x32xf32, #tpu.memory_space<vmem>>, vector<2x8xf32>
    tpu.vector_store %arg30[%c0_69, %c16_70], %124 {strides = array<i32>} : memref<2x32xf32, #tpu.memory_space<vmem>>, vector<2x8xf32>,
    %c0_71 = arith.constant 0 : index
    %c24 = arith.constant 24 : index
    %126 = vector.load %arg28[%c0_71, %c24] : memref<2x96xf32, #tpu.memory_space<vmem>>, vector<2x8xf32>
    %cst_72 = arith.constant 0.353553385 : f32
    %127 = vector.broadcast %cst_72 : f32 to vector<2x8xf32>
    %128 = arith.mulf %126, %127 : vector<2x8xf32>
    %c0_73 = arith.constant 0 : index
    %c56 = arith.constant 56 : index
    %129 = vector.load %arg28[%c0_73, %c56] : memref<2x96xf32, #tpu.memory_space<vmem>>, vector<2x8xf32>
    %c0_74 = arith.constant 0 : index
    %c88 = arith.constant 88 : index
    %130 = vector.load %arg28[%c0_74, %c88] : memref<2x96xf32, #tpu.memory_space<vmem>>, vector<2x8xf32>
    %c0_75 = arith.constant 0 : index
    %c3 = arith.constant 3 : index
    %c0_76 = arith.constant 0 : index
    %c0_77 = arith.constant 0 : index
    %131 = vector.load %arg4[%c0_75, %c3, %c0_76, %c0_77] : memref<2x4x2x8xf32, #tpu.memory_space<vmem>>, vector<2x1x2x8xf32>
    %132 = vector.shape_cast %131 : vector<2x1x2x8xf32> to vector<2x2x8xf32>
    %c0_78 = arith.constant 0 : index
    %c3_79 = arith.constant 3 : index
    %c0_80 = arith.constant 0 : index
    %c0_81 = arith.constant 0 : index
    %133 = vector.load %arg5[%c0_78, %c3_79, %c0_80, %c0_81] : memref<2x4x2x8xf32, #tpu.memory_space<vmem>>, vector<2x1x2x8xf32>
    %134 = vector.shape_cast %133 : vector<2x1x2x8xf32> to vector<2x2x8xf32>
    %135 = vector.shape_cast %128 : vector<2x8xf32> to vector<2x1x8xf32>
    %136 = vector.broadcast %135 : vector<2x1x8xf32> to vector<2x2x8xf32>
    %137 = arith.mulf %136, %132 : vector<2x2x8xf32>
    %cst_82 = arith.constant dense<0.000000e+00> : vector<2x2xf32>
    %138 = vector.multi_reduction <add>, %137, %cst_82 [2] : vector<2x2x8xf32> to vector<2x2xf32>
    %139 = arith.mulf %128, %129 : vector<2x8xf32>
    %cst_83 = arith.constant dense<0.000000e+00> : vector<2xf32>
    %140 = vector.multi_reduction <add>, %139, %cst_83 [1] : vector<2x8xf32> to vector<2xf32>
    %141 = vector.shape_cast %140 : vector<2xf32> to vector<2x1xf32>
    %cst_84 = arith.constant dense<0xFF800000> : vector<2xf32>
    %142 = vector.multi_reduction <maximumf>, %138, %cst_84 [1] : vector<2x2xf32> to vector<2xf32>
    %143 = vector.shape_cast %142 : vector<2xf32> to vector<2x1xf32>
    %144 = arith.maximumf %143, %141 : vector<2x1xf32>
    %145 = vector.broadcast %144 : vector<2x1xf32> to vector<2x2xf32>
    %146 = arith.subf %138, %145 : vector<2x2xf32>
    %147 = math.exp %146 : vector<2x2xf32>
    %148 = arith.subf %141, %144 : vector<2x1xf32>
    %149 = math.exp %148 : vector<2x1xf32>
    %cst_85 = arith.constant dense<0.000000e+00> : vector<2xf32>
    %150 = vector.multi_reduction <add>, %147, %cst_85 [1] : vector<2x2xf32> to vector<2xf32>
    %151 = vector.shape_cast %150 : vector<2xf32> to vector<2x1xf32>
    %152 = arith.addf %151, %149 : vector<2x1xf32>
    %153 = tpu.reciprocal %152 {approx = true} : vector<2x1xf32> -> vector<2x1xf32>
    %154 = vector.shape_cast %147 : vector<2x2xf32> to vector<2x2x1xf32>
    %155 = vector.broadcast %154 : vector<2x2x1xf32> to vector<2x2x8xf32>
    %156 = arith.mulf %155, %134 : vector<2x2x8xf32>
    %cst_86 = arith.constant dense<0.000000e+00> : vector<2x8xf32>
    %157 = vector.multi_reduction <add>, %156, %cst_86 [1] : vector<2x2x8xf32> to vector<2x8xf32>
    %158 = vector.broadcast %149 : vector<2x1xf32> to vector<2x8xf32>
    %159 = arith.mulf %158, %130 : vector<2x8xf32>
    %160 = arith.addf %157, %159 : vector<2x8xf32>
    %161 = vector.broadcast %153 : vector<2x1xf32> to vector<2x8xf32>
    %162 = arith.mulf %160, %161 : vector<2x8xf32>
    %c0_87 = arith.constant 0 : index
    %c24_88 = arith.constant 24 : index
    %163 = vector.load %arg30[%c0_87, %c24_88] : memref<2x32xf32, #tpu.memory_space<vmem>>, vector<2x8xf32>
    tpu.vector_store %arg30[%c0_87, %c24_88], %162 {strides = array<i32>} : memref<2x32xf32, #tpu.memory_space<vmem>>, vector<2x8xf32>,
    %c0_89 = arith.constant 0 : index
    %c0_90 = arith.constant 0 : index
    %164 = vector.load %arg30[%c0_89, %c0_90] : memref<2x32xf32, #tpu.memory_space<vmem>>, vector<2x32xf32>
    %165 = arith.truncf %164 : vector<2x32xf32> to vector<2x32xbf16>
    %c0_91 = arith.constant 0 : index
    %c0_92 = arith.constant 0 : index
    %166 = vector.load %arg8[%c0_91, %c0_92] : memref<32x32xbf16, #tpu.memory_space<vmem>>, vector<32x32xbf16>
    %cst_93 = arith.constant dense<0.000000e+00> : vector<2x32xf32>
    %167 = tpu.matmul %165, %166, %cst_93 {dimension_numbers = #tpu.dot_dimension_numbers<[1], [0], [0], [1], [0, 0, 1, 1], [], []>} : vector<2x32xbf16>, vector<32x32xbf16>, vector<2x32xf32> -> vector<2x32xf32>
    %c0_94 = arith.constant 0 : index
    %c0_95 = arith.constant 0 : index
    %168 = vector.load %arg9[%c0_94, %c0_95] : memref<1x32xf32, #tpu.memory_space<vmem>>, vector<1x32xf32>
    %169 = vector.broadcast %168 : vector<1x32xf32> to vector<2x32xf32>
    %170 = arith.addf %167, %169 : vector<2x32xf32>
    %171 = arith.addf %0, %170 : vector<2x32xf32>
    %cst_96 = arith.constant dense<0.000000e+00> : vector<2xf32>
    %172 = vector.multi_reduction <add>, %171, %cst_96 [1] : vector<2x32xf32> to vector<2xf32>
    %173 = vector.shape_cast %172 : vector<2xf32> to vector<2x1xf32>
    %cst_97 = arith.constant 3.200000e+01 : f32
    %174 = vector.broadcast %cst_97 : f32 to vector<2x1xf32>
    %175 = arith.divf %173, %174 : vector<2x1xf32>
    %176 = vector.broadcast %175 : vector<2x1xf32> to vector<2x32xf32>
    %177 = arith.subf %171, %176 : vector<2x32xf32>
    %178 = arith.mulf %177, %177 : vector<2x32xf32>
    %cst_98 = arith.constant dense<0.000000e+00> : vector<2xf32>
    %179 = vector.multi_reduction <add>, %178, %cst_98 [1] : vector<2x32xf32> to vector<2xf32>
    %180 = vector.shape_cast %179 : vector<2xf32> to vector<2x1xf32>
    %cst_99 = arith.constant 3.200000e+01 : f32
    %181 = vector.broadcast %cst_99 : f32 to vector<2x1xf32>
    %182 = arith.divf %180, %181 : vector<2x1xf32>
    %cst_100 = arith.constant 9.99999974E-6 : f32
    %183 = vector.broadcast %cst_100 : f32 to vector<2x1xf32>
    %184 = arith.addf %182, %183 : vector<2x1xf32>
    %185 = math.rsqrt %184 : vector<2x1xf32>
    %186 = vector.broadcast %185 : vector<2x1xf32> to vector<2x32xf32>
    %187 = arith.mulf %177, %186 : vector<2x32xf32>
    %c0_101 = arith.constant 0 : index
    %c0_102 = arith.constant 0 : index
    %188 = vector.load %arg10[%c0_101, %c0_102] : memref<1x32xf32, #tpu.memory_space<vmem>>, vector<1x32xf32>
    %189 = vector.broadcast %188 : vector<1x32xf32> to vector<2x32xf32>
    %190 = arith.mulf %187, %189 : vector<2x32xf32>
    %c0_103 = arith.constant 0 : index
    %c0_104 = arith.constant 0 : index
    %191 = vector.load %arg11[%c0_103, %c0_104] : memref<1x32xf32, #tpu.memory_space<vmem>>, vector<1x32xf32>
    %192 = vector.broadcast %191 : vector<1x32xf32> to vector<2x32xf32>
    %193 = arith.addf %190, %192 : vector<2x32xf32>
    %194 = arith.truncf %193 : vector<2x32xf32> to vector<2x32xbf16>
    %c0_105 = arith.constant 0 : index
    %c0_106 = arith.constant 0 : index
    %195 = vector.load %arg12[%c0_105, %c0_106] : memref<32x32xbf16, #tpu.memory_space<vmem>>, vector<32x32xbf16>
    %cst_107 = arith.constant dense<0.000000e+00> : vector<2x32xf32>
    %196 = tpu.matmul %194, %195, %cst_107 {dimension_numbers = #tpu.dot_dimension_numbers<[1], [0], [0], [1], [0, 0, 1, 1], [], []>} : vector<2x32xbf16>, vector<32x32xbf16>, vector<2x32xf32> -> vector<2x32xf32>
    %c0_108 = arith.constant 0 : index
    %c0_109 = arith.constant 0 : index
    %197 = vector.load %arg13[%c0_108, %c0_109] : memref<1x32xf32, #tpu.memory_space<vmem>>, vector<1x32xf32>
    %198 = vector.broadcast %197 : vector<1x32xf32> to vector<2x32xf32>
    %199 = arith.addf %196, %198 : vector<2x32xf32>
    %c0_110 = arith.constant 0 : index
    %c0_111 = arith.constant 0 : index
    %200 = vector.load %arg29[%c0_110, %c0_111] : memref<2x32xf32, #tpu.memory_space<vmem>>, vector<2x32xf32>
    tpu.vector_store %arg29[%c0_110, %c0_111], %199 {strides = array<i32>} : memref<2x32xf32, #tpu.memory_space<vmem>>, vector<2x32xf32>,
    %c0_112 = arith.constant 0 : index
    %c0_113 = arith.constant 0 : index
    %201 = vector.load %arg1[%c0_112, %c0_113] : memref<2x8xf32, #tpu.memory_space<vmem>>, vector<2x8xf32>
    %cst_114 = arith.constant 0.000000e+00 : f32
    %202 = vector.broadcast %cst_114 : f32 to vector<2x8xf32>
    %203 = arith.cmpf one, %201, %202 : vector<2x8xf32>
    %cst_115 = arith.constant -1.000000e+30 : f32
    %cst_116 = arith.constant 0.000000e+00 : f32
    %204 = vector.broadcast %cst_115 : f32 to vector<2x8xf32>
    %205 = vector.broadcast %cst_116 : f32 to vector<2x8xf32>
    %206 = arith.select %203, %204, %205 : vector<2x8xi1>, vector<2x8xf32>
    %cst_117 = arith.constant 0.000000e+00 : f32
    %207 = vector.broadcast %cst_117 : f32 to vector<2x8xf32>
    %c0_118 = arith.constant 0 : index
    %c0_119 = arith.constant 0 : index
    %208 = vector.load %arg29[%c0_118, %c0_119] : memref<2x32xf32, #tpu.memory_space<vmem>>, vector<2x8xf32>
    %cst_120 = arith.constant 0.353553385 : f32
    %209 = vector.broadcast %cst_120 : f32 to vector<2x8xf32>
    %210 = arith.mulf %208, %209 : vector<2x8xf32>
    %c0_121 = arith.constant 0 : index
    %c0_122 = arith.constant 0 : index
    %c0_123 = arith.constant 0 : index
    %c0_124 = arith.constant 0 : index
    %211 = vector.load %arg2[%c0_121, %c0_122, %c0_123, %c0_124] : memref<2x4x8x8xf32, #tpu.memory_space<vmem>>, vector<2x1x8x8xf32>
    %212 = vector.shape_cast %211 : vector<2x1x8x8xf32> to vector<2x8x8xf32>
    %c0_125 = arith.constant 0 : index
    %c0_126 = arith.constant 0 : index
    %c0_127 = arith.constant 0 : index
    %c0_128 = arith.constant 0 : index
    %213 = vector.load %arg3[%c0_125, %c0_126, %c0_127, %c0_128] : memref<2x4x8x8xf32, #tpu.memory_space<vmem>>, vector<2x1x8x8xf32>
    %214 = vector.shape_cast %213 : vector<2x1x8x8xf32> to vector<2x8x8xf32>
    %215 = vector.shape_cast %210 : vector<2x8xf32> to vector<2x1x8xf32>
    %216 = vector.broadcast %215 : vector<2x1x8xf32> to vector<2x8x8xf32>
    %217 = arith.mulf %216, %212 : vector<2x8x8xf32>
    %cst_129 = arith.constant dense<0.000000e+00> : vector<2x8xf32>
    %218 = vector.multi_reduction <add>, %217, %cst_129 [2] : vector<2x8x8xf32> to vector<2x8xf32>
    %219 = arith.addf %218, %206 : vector<2x8xf32>
    %cst_130 = arith.constant dense<0xFF800000> : vector<2xf32>
    %220 = vector.multi_reduction <maximumf>, %219, %cst_130 [1] : vector<2x8xf32> to vector<2xf32>
    %221 = vector.shape_cast %220 : vector<2xf32> to vector<2x1xf32>
    %222 = vector.broadcast %221 : vector<2x1xf32> to vector<2x8xf32>
    %223 = arith.subf %219, %222 : vector<2x8xf32>
    %224 = math.exp %223 : vector<2x8xf32>
    %cst_131 = arith.constant dense<0.000000e+00> : vector<2xf32>
    %225 = vector.multi_reduction <add>, %224, %cst_131 [1] : vector<2x8xf32> to vector<2xf32>
    %226 = vector.shape_cast %225 : vector<2xf32> to vector<2x1xf32>
    %227 = tpu.reciprocal %226 {approx = true} : vector<2x1xf32> -> vector<2x1xf32>
    %228 = vector.broadcast %227 : vector<2x1xf32> to vector<2x8xf32>
    %229 = arith.mulf %224, %228 : vector<2x8xf32>
    %230 = arith.addf %207, %229 : vector<2x8xf32>
    %231 = vector.shape_cast %229 : vector<2x8xf32> to vector<2x8x1xf32>
    %232 = vector.broadcast %231 : vector<2x8x1xf32> to vector<2x8x8xf32>
    %233 = arith.mulf %232, %214 : vector<2x8x8xf32>
    %cst_132 = arith.constant dense<0.000000e+00> : vector<2x8xf32>
    %234 = vector.multi_reduction <add>, %233, %cst_132 [1] : vector<2x8x8xf32> to vector<2x8xf32>
    %c0_133 = arith.constant 0 : index
    %c0_134 = arith.constant 0 : index
    %235 = vector.load %arg31[%c0_133, %c0_134] : memref<2x32xf32, #tpu.memory_space<vmem>>, vector<2x8xf32>
    tpu.vector_store %arg31[%c0_133, %c0_134], %234 {strides = array<i32>} : memref<2x32xf32, #tpu.memory_space<vmem>>, vector<2x8xf32>,
    %c0_135 = arith.constant 0 : index
    %c8_136 = arith.constant 8 : index
    %236 = vector.load %arg29[%c0_135, %c8_136] : memref<2x32xf32, #tpu.memory_space<vmem>>, vector<2x8xf32>
    %cst_137 = arith.constant 0.353553385 : f32
    %237 = vector.broadcast %cst_137 : f32 to vector<2x8xf32>
    %238 = arith.mulf %236, %237 : vector<2x8xf32>
    %c0_138 = arith.constant 0 : index
    %c1_139 = arith.constant 1 : index
    %c0_140 = arith.constant 0 : index
    %c0_141 = arith.constant 0 : index
    %239 = vector.load %arg2[%c0_138, %c1_139, %c0_140, %c0_141] : memref<2x4x8x8xf32, #tpu.memory_space<vmem>>, vector<2x1x8x8xf32>
    %240 = vector.shape_cast %239 : vector<2x1x8x8xf32> to vector<2x8x8xf32>
    %c0_142 = arith.constant 0 : index
    %c1_143 = arith.constant 1 : index
    %c0_144 = arith.constant 0 : index
    %c0_145 = arith.constant 0 : index
    %241 = vector.load %arg3[%c0_142, %c1_143, %c0_144, %c0_145] : memref<2x4x8x8xf32, #tpu.memory_space<vmem>>, vector<2x1x8x8xf32>
    %242 = vector.shape_cast %241 : vector<2x1x8x8xf32> to vector<2x8x8xf32>
    %243 = vector.shape_cast %238 : vector<2x8xf32> to vector<2x1x8xf32>
    %244 = vector.broadcast %243 : vector<2x1x8xf32> to vector<2x8x8xf32>
    %245 = arith.mulf %244, %240 : vector<2x8x8xf32>
    %cst_146 = arith.constant dense<0.000000e+00> : vector<2x8xf32>
    %246 = vector.multi_reduction <add>, %245, %cst_146 [2] : vector<2x8x8xf32> to vector<2x8xf32>
    %247 = arith.addf %246, %206 : vector<2x8xf32>
    %cst_147 = arith.constant dense<0xFF800000> : vector<2xf32>
    %248 = vector.multi_reduction <maximumf>, %247, %cst_147 [1] : vector<2x8xf32> to vector<2xf32>
    %249 = vector.shape_cast %248 : vector<2xf32> to vector<2x1xf32>
    %250 = vector.broadcast %249 : vector<2x1xf32> to vector<2x8xf32>
    %251 = arith.subf %247, %250 : vector<2x8xf32>
    %252 = math.exp %251 : vector<2x8xf32>
    %cst_148 = arith.constant dense<0.000000e+00> : vector<2xf32>
    %253 = vector.multi_reduction <add>, %252, %cst_148 [1] : vector<2x8xf32> to vector<2xf32>
    %254 = vector.shape_cast %253 : vector<2xf32> to vector<2x1xf32>
    %255 = tpu.reciprocal %254 {approx = true} : vector<2x1xf32> -> vector<2x1xf32>
    %256 = vector.broadcast %255 : vector<2x1xf32> to vector<2x8xf32>
    %257 = arith.mulf %252, %256 : vector<2x8xf32>
    %258 = arith.addf %230, %257 : vector<2x8xf32>
    %259 = vector.shape_cast %257 : vector<2x8xf32> to vector<2x8x1xf32>
    %260 = vector.broadcast %259 : vector<2x8x1xf32> to vector<2x8x8xf32>
    %261 = arith.mulf %260, %242 : vector<2x8x8xf32>
    %cst_149 = arith.constant dense<0.000000e+00> : vector<2x8xf32>
    %262 = vector.multi_reduction <add>, %261, %cst_149 [1] : vector<2x8x8xf32> to vector<2x8xf32>
    %c0_150 = arith.constant 0 : index
    %c8_151 = arith.constant 8 : index
    %263 = vector.load %arg31[%c0_150, %c8_151] : memref<2x32xf32, #tpu.memory_space<vmem>>, vector<2x8xf32>
    tpu.vector_store %arg31[%c0_150, %c8_151], %262 {strides = array<i32>} : memref<2x32xf32, #tpu.memory_space<vmem>>, vector<2x8xf32>,
    %c0_152 = arith.constant 0 : index
    %c16_153 = arith.constant 16 : index
    %264 = vector.load %arg29[%c0_152, %c16_153] : memref<2x32xf32, #tpu.memory_space<vmem>>, vector<2x8xf32>
    %cst_154 = arith.constant 0.353553385 : f32
    %265 = vector.broadcast %cst_154 : f32 to vector<2x8xf32>
    %266 = arith.mulf %264, %265 : vector<2x8xf32>
    %c0_155 = arith.constant 0 : index
    %c2_156 = arith.constant 2 : index
    %c0_157 = arith.constant 0 : index
    %c0_158 = arith.constant 0 : index
    %267 = vector.load %arg2[%c0_155, %c2_156, %c0_157, %c0_158] : memref<2x4x8x8xf32, #tpu.memory_space<vmem>>, vector<2x1x8x8xf32>
    %268 = vector.shape_cast %267 : vector<2x1x8x8xf32> to vector<2x8x8xf32>
    %c0_159 = arith.constant 0 : index
    %c2_160 = arith.constant 2 : index
    %c0_161 = arith.constant 0 : index
    %c0_162 = arith.constant 0 : index
    %269 = vector.load %arg3[%c0_159, %c2_160, %c0_161, %c0_162] : memref<2x4x8x8xf32, #tpu.memory_space<vmem>>, vector<2x1x8x8xf32>
    %270 = vector.shape_cast %269 : vector<2x1x8x8xf32> to vector<2x8x8xf32>
    %271 = vector.shape_cast %266 : vector<2x8xf32> to vector<2x1x8xf32>
    %272 = vector.broadcast %271 : vector<2x1x8xf32> to vector<2x8x8xf32>
    %273 = arith.mulf %272, %268 : vector<2x8x8xf32>
    %cst_163 = arith.constant dense<0.000000e+00> : vector<2x8xf32>
    %274 = vector.multi_reduction <add>, %273, %cst_163 [2] : vector<2x8x8xf32> to vector<2x8xf32>
    %275 = arith.addf %274, %206 : vector<2x8xf32>
    %cst_164 = arith.constant dense<0xFF800000> : vector<2xf32>
    %276 = vector.multi_reduction <maximumf>, %275, %cst_164 [1] : vector<2x8xf32> to vector<2xf32>
    %277 = vector.shape_cast %276 : vector<2xf32> to vector<2x1xf32>
    %278 = vector.broadcast %277 : vector<2x1xf32> to vector<2x8xf32>
    %279 = arith.subf %275, %278 : vector<2x8xf32>
    %280 = math.exp %279 : vector<2x8xf32>
    %cst_165 = arith.constant dense<0.000000e+00> : vector<2xf32>
    %281 = vector.multi_reduction <add>, %280, %cst_165 [1] : vector<2x8xf32> to vector<2xf32>
    %282 = vector.shape_cast %281 : vector<2xf32> to vector<2x1xf32>
    %283 = tpu.reciprocal %282 {approx = true} : vector<2x1xf32> -> vector<2x1xf32>
    %284 = vector.broadcast %283 : vector<2x1xf32> to vector<2x8xf32>
    %285 = arith.mulf %280, %284 : vector<2x8xf32>
    %286 = arith.addf %258, %285 : vector<2x8xf32>
    %287 = vector.shape_cast %285 : vector<2x8xf32> to vector<2x8x1xf32>
    %288 = vector.broadcast %287 : vector<2x8x1xf32> to vector<2x8x8xf32>
    %289 = arith.mulf %288, %270 : vector<2x8x8xf32>
    %cst_166 = arith.constant dense<0.000000e+00> : vector<2x8xf32>
    %290 = vector.multi_reduction <add>, %289, %cst_166 [1] : vector<2x8x8xf32> to vector<2x8xf32>
    %c0_167 = arith.constant 0 : index
    %c16_168 = arith.constant 16 : index
    %291 = vector.load %arg31[%c0_167, %c16_168] : memref<2x32xf32, #tpu.memory_space<vmem>>, vector<2x8xf32>
    tpu.vector_store %arg31[%c0_167, %c16_168], %290 {strides = array<i32>} : memref<2x32xf32, #tpu.memory_space<vmem>>, vector<2x8xf32>,
    %c0_169 = arith.constant 0 : index
    %c24_170 = arith.constant 24 : index
    %292 = vector.load %arg29[%c0_169, %c24_170] : memref<2x32xf32, #tpu.memory_space<vmem>>, vector<2x8xf32>
    %cst_171 = arith.constant 0.353553385 : f32
    %293 = vector.broadcast %cst_171 : f32 to vector<2x8xf32>
    %294 = arith.mulf %292, %293 : vector<2x8xf32>
    %c0_172 = arith.constant 0 : index
    %c3_173 = arith.constant 3 : index
    %c0_174 = arith.constant 0 : index
    %c0_175 = arith.constant 0 : index
    %295 = vector.load %arg2[%c0_172, %c3_173, %c0_174, %c0_175] : memref<2x4x8x8xf32, #tpu.memory_space<vmem>>, vector<2x1x8x8xf32>
    %296 = vector.shape_cast %295 : vector<2x1x8x8xf32> to vector<2x8x8xf32>
    %c0_176 = arith.constant 0 : index
    %c3_177 = arith.constant 3 : index
    %c0_178 = arith.constant 0 : index
    %c0_179 = arith.constant 0 : index
    %297 = vector.load %arg3[%c0_176, %c3_177, %c0_178, %c0_179] : memref<2x4x8x8xf32, #tpu.memory_space<vmem>>, vector<2x1x8x8xf32>
    %298 = vector.shape_cast %297 : vector<2x1x8x8xf32> to vector<2x8x8xf32>
    %299 = vector.shape_cast %294 : vector<2x8xf32> to vector<2x1x8xf32>
    %300 = vector.broadcast %299 : vector<2x1x8xf32> to vector<2x8x8xf32>
    %301 = arith.mulf %300, %296 : vector<2x8x8xf32>
    %cst_180 = arith.constant dense<0.000000e+00> : vector<2x8xf32>
    %302 = vector.multi_reduction <add>, %301, %cst_180 [2] : vector<2x8x8xf32> to vector<2x8xf32>
    %303 = arith.addf %302, %206 : vector<2x8xf32>
    %cst_181 = arith.constant dense<0xFF800000> : vector<2xf32>
    %304 = vector.multi_reduction <maximumf>, %303, %cst_181 [1] : vector<2x8xf32> to vector<2xf32>
    %305 = vector.shape_cast %304 : vector<2xf32> to vector<2x1xf32>
    %306 = vector.broadcast %305 : vector<2x1xf32> to vector<2x8xf32>
    %307 = arith.subf %303, %306 : vector<2x8xf32>
    %308 = math.exp %307 : vector<2x8xf32>
    %cst_182 = arith.constant dense<0.000000e+00> : vector<2xf32>
    %309 = vector.multi_reduction <add>, %308, %cst_182 [1] : vector<2x8xf32> to vector<2xf32>
    %310 = vector.shape_cast %309 : vector<2xf32> to vector<2x1xf32>
    %311 = tpu.reciprocal %310 {approx = true} : vector<2x1xf32> -> vector<2x1xf32>
    %312 = vector.broadcast %311 : vector<2x1xf32> to vector<2x8xf32>
    %313 = arith.mulf %308, %312 : vector<2x8xf32>
    %314 = arith.addf %286, %313 : vector<2x8xf32>
    %315 = vector.shape_cast %313 : vector<2x8xf32> to vector<2x8x1xf32>
    %316 = vector.broadcast %315 : vector<2x8x1xf32> to vector<2x8x8xf32>
    %317 = arith.mulf %316, %298 : vector<2x8x8xf32>
    %cst_183 = arith.constant dense<0.000000e+00> : vector<2x8xf32>
    %318 = vector.multi_reduction <add>, %317, %cst_183 [1] : vector<2x8x8xf32> to vector<2x8xf32>
    %c0_184 = arith.constant 0 : index
    %c24_185 = arith.constant 24 : index
    %319 = vector.load %arg31[%c0_184, %c24_185] : memref<2x32xf32, #tpu.memory_space<vmem>>, vector<2x8xf32>
    tpu.vector_store %arg31[%c0_184, %c24_185], %318 {strides = array<i32>} : memref<2x32xf32, #tpu.memory_space<vmem>>, vector<2x8xf32>,
    %cst_186 = arith.constant 2.500000e-01 : f32
    %320 = vector.broadcast %cst_186 : f32 to vector<2x8xf32>
    %321 = arith.mulf %314, %320 : vector<2x8xf32>
    %c0_187 = arith.constant 0 : index
    %c0_188 = arith.constant 0 : index
    %322 = vector.load %arg27[%c0_187, %c0_188] : memref<2x8xf32, #tpu.memory_space<vmem>>, vector<2x8xf32>
    tpu.vector_store %arg27[%c0_187, %c0_188], %321 {strides = array<i32>} : memref<2x8xf32, #tpu.memory_space<vmem>>, vector<2x8xf32>,
    %c0_189 = arith.constant 0 : index
    %c0_190 = arith.constant 0 : index
    %323 = vector.load %arg31[%c0_189, %c0_190] : memref<2x32xf32, #tpu.memory_space<vmem>>, vector<2x32xf32>
    %324 = arith.truncf %323 : vector<2x32xf32> to vector<2x32xbf16>
    %c0_191 = arith.constant 0 : index
    %c0_192 = arith.constant 0 : index
    %325 = vector.load %arg14[%c0_191, %c0_192] : memref<32x32xbf16, #tpu.memory_space<vmem>>, vector<32x32xbf16>
    %cst_193 = arith.constant dense<0.000000e+00> : vector<2x32xf32>
    %326 = tpu.matmul %324, %325, %cst_193 {dimension_numbers = #tpu.dot_dimension_numbers<[1], [0], [0], [1], [0, 0, 1, 1], [], []>} : vector<2x32xbf16>, vector<32x32xbf16>, vector<2x32xf32> -> vector<2x32xf32>
    %c0_194 = arith.constant 0 : index
    %c0_195 = arith.constant 0 : index
    %327 = vector.load %arg15[%c0_194, %c0_195] : memref<1x32xf32, #tpu.memory_space<vmem>>, vector<1x32xf32>
    %328 = vector.broadcast %327 : vector<1x32xf32> to vector<2x32xf32>
    %329 = arith.addf %326, %328 : vector<2x32xf32>
    %330 = arith.addf %193, %329 : vector<2x32xf32>
    %cst_196 = arith.constant dense<0.000000e+00> : vector<2xf32>
    %331 = vector.multi_reduction <add>, %330, %cst_196 [1] : vector<2x32xf32> to vector<2xf32>
    %332 = vector.shape_cast %331 : vector<2xf32> to vector<2x1xf32>
    %cst_197 = arith.constant 3.200000e+01 : f32
    %333 = vector.broadcast %cst_197 : f32 to vector<2x1xf32>
    %334 = arith.divf %332, %333 : vector<2x1xf32>
    %335 = vector.broadcast %334 : vector<2x1xf32> to vector<2x32xf32>
    %336 = arith.subf %330, %335 : vector<2x32xf32>
    %337 = arith.mulf %336, %336 : vector<2x32xf32>
    %cst_198 = arith.constant dense<0.000000e+00> : vector<2xf32>
    %338 = vector.multi_reduction <add>, %337, %cst_198 [1] : vector<2x32xf32> to vector<2xf32>
    %339 = vector.shape_cast %338 : vector<2xf32> to vector<2x1xf32>
    %cst_199 = arith.constant 3.200000e+01 : f32
    %340 = vector.broadcast %cst_199 : f32 to vector<2x1xf32>
    %341 = arith.divf %339, %340 : vector<2x1xf32>
    %cst_200 = arith.constant 9.99999974E-6 : f32
    %342 = vector.broadcast %cst_200 : f32 to vector<2x1xf32>
    %343 = arith.addf %341, %342 : vector<2x1xf32>
    %344 = math.rsqrt %343 : vector<2x1xf32>
    %345 = vector.broadcast %344 : vector<2x1xf32> to vector<2x32xf32>
    %346 = arith.mulf %336, %345 : vector<2x32xf32>
    %c0_201 = arith.constant 0 : index
    %c0_202 = arith.constant 0 : index
    %347 = vector.load %arg16[%c0_201, %c0_202] : memref<1x32xf32, #tpu.memory_space<vmem>>, vector<1x32xf32>
    %348 = vector.broadcast %347 : vector<1x32xf32> to vector<2x32xf32>
    %349 = arith.mulf %346, %348 : vector<2x32xf32>
    %c0_203 = arith.constant 0 : index
    %c0_204 = arith.constant 0 : index
    %350 = vector.load %arg17[%c0_203, %c0_204] : memref<1x32xf32, #tpu.memory_space<vmem>>, vector<1x32xf32>
    %351 = vector.broadcast %350 : vector<1x32xf32> to vector<2x32xf32>
    %352 = arith.addf %349, %351 : vector<2x32xf32>
    %353 = arith.truncf %352 : vector<2x32xf32> to vector<2x32xbf16>
    %c0_205 = arith.constant 0 : index
    %c0_206 = arith.constant 0 : index
    %354 = vector.load %arg18[%c0_205, %c0_206] : memref<32x64xbf16, #tpu.memory_space<vmem>>, vector<32x64xbf16>
    %cst_207 = arith.constant dense<0.000000e+00> : vector<2x64xf32>
    %355 = tpu.matmul %353, %354, %cst_207 {dimension_numbers = #tpu.dot_dimension_numbers<[1], [0], [0], [1], [0, 0, 1, 1], [], []>} : vector<2x32xbf16>, vector<32x64xbf16>, vector<2x64xf32> -> vector<2x64xf32>
    %c0_208 = arith.constant 0 : index
    %c0_209 = arith.constant 0 : index
    %356 = vector.load %arg19[%c0_208, %c0_209] : memref<1x64xf32, #tpu.memory_space<vmem>>, vector<1x64xf32>
    %357 = vector.broadcast %356 : vector<1x64xf32> to vector<2x64xf32>
    %358 = arith.addf %355, %357 : vector<2x64xf32>
    %cst_210 = arith.constant 0.000000e+00 : f32
    %359 = vector.broadcast %cst_210 : f32 to vector<2x64xf32>
    %360 = arith.maximumf %358, %359 : vector<2x64xf32>
    %361 = arith.truncf %360 : vector<2x64xf32> to vector<2x64xbf16>
    %c0_211 = arith.constant 0 : index
    %c0_212 = arith.constant 0 : index
    %362 = vector.load %arg20[%c0_211, %c0_212] : memref<64x32xbf16, #tpu.memory_space<vmem>>, vector<64x32xbf16>
    %cst_213 = arith.constant dense<0.000000e+00> : vector<2x32xf32>
    %363 = tpu.matmul %361, %362, %cst_213 {dimension_numbers = #tpu.dot_dimension_numbers<[1], [0], [0], [1], [0, 0, 1, 1], [], []>} : vector<2x64xbf16>, vector<64x32xbf16>, vector<2x32xf32> -> vector<2x32xf32>
    %c0_214 = arith.constant 0 : index
    %c0_215 = arith.constant 0 : index
    %364 = vector.load %arg21[%c0_214, %c0_215] : memref<1x32xf32, #tpu.memory_space<vmem>>, vector<1x32xf32>
    %365 = vector.broadcast %364 : vector<1x32xf32> to vector<2x32xf32>
    %366 = arith.addf %363, %365 : vector<2x32xf32>
    %367 = arith.addf %352, %366 : vector<2x32xf32>
    %cst_216 = arith.constant dense<0.000000e+00> : vector<2xf32>
    %368 = vector.multi_reduction <add>, %367, %cst_216 [1] : vector<2x32xf32> to vector<2xf32>
    %369 = vector.shape_cast %368 : vector<2xf32> to vector<2x1xf32>
    %cst_217 = arith.constant 3.200000e+01 : f32
    %370 = vector.broadcast %cst_217 : f32 to vector<2x1xf32>
    %371 = arith.divf %369, %370 : vector<2x1xf32>
    %372 = vector.broadcast %371 : vector<2x1xf32> to vector<2x32xf32>
    %373 = arith.subf %367, %372 : vector<2x32xf32>
    %374 = arith.mulf %373, %373 : vector<2x32xf32>
    %cst_218 = arith.constant dense<0.000000e+00> : vector<2xf32>
    %375 = vector.multi_reduction <add>, %374, %cst_218 [1] : vector<2x32xf32> to vector<2xf32>
    %376 = vector.shape_cast %375 : vector<2xf32> to vector<2x1xf32>
    %cst_219 = arith.constant 3.200000e+01 : f32
    %377 = vector.broadcast %cst_219 : f32 to vector<2x1xf32>
    %378 = arith.divf %376, %377 : vector<2x1xf32>
    %cst_220 = arith.constant 9.99999974E-6 : f32
    %379 = vector.broadcast %cst_220 : f32 to vector<2x1xf32>
    %380 = arith.addf %378, %379 : vector<2x1xf32>
    %381 = math.rsqrt %380 : vector<2x1xf32>
    %382 = vector.broadcast %381 : vector<2x1xf32> to vector<2x32xf32>
    %383 = arith.mulf %373, %382 : vector<2x32xf32>
    %c0_221 = arith.constant 0 : index
    %c0_222 = arith.constant 0 : index
    %384 = vector.load %arg22[%c0_221, %c0_222] : memref<1x32xf32, #tpu.memory_space<vmem>>, vector<1x32xf32>
    %385 = vector.broadcast %384 : vector<1x32xf32> to vector<2x32xf32>
    %386 = arith.mulf %383, %385 : vector<2x32xf32>
    %c0_223 = arith.constant 0 : index
    %c0_224 = arith.constant 0 : index
    %387 = vector.load %arg23[%c0_223, %c0_224] : memref<1x32xf32, #tpu.memory_space<vmem>>, vector<1x32xf32>
    %388 = vector.broadcast %387 : vector<1x32xf32> to vector<2x32xf32>
    %389 = arith.addf %386, %388 : vector<2x32xf32>
    %c0_225 = arith.constant 0 : index
    %c0_226 = arith.constant 0 : index
    %390 = vector.load %arg24[%c0_225, %c0_226] : memref<2x32xf32, #tpu.memory_space<vmem>>, vector<2x32xf32>
    tpu.vector_store %arg24[%c0_225, %c0_226], %389 {strides = array<i32>} : memref<2x32xf32, #tpu.memory_space<vmem>>, vector<2x32xf32>,
    return
  }
}

module attributes {stable_mosaic.version = 11 : i64} {
  func.func @_out_proj_kernel(%arg0: i32, %arg1: memref<2x32xf32, #tpu.memory_space<vmem>>, %arg2: memref<32x256xbf16, #tpu.memory_space<vmem>>, %arg3: memref<2x256xf32, #tpu.memory_space<vmem>>) attributes {dimension_semantics = [#tpu.dimension_semantics<parallel>], iteration_bounds = array<i64: 2>, scalar_prefetch = 0 : i64, scratch_operands = 0 : i64, tpu.core_type = #tpu.core_type<tc>, window_params = [{pipeline_mode = #tpu.pipeline_mode<synchronous>, transform_indices = @transform_0, window_bounds = array<i64: 2, 32>}, {transform_indices = @transform_1, window_bounds = array<i64: 32, 256>}, {transform_indices = @transform_2, window_bounds = array<i64: 2, 256>}]} {
    %c0 = arith.constant 0 : index
    %c0_0 = arith.constant 0 : index
    %0 = vector.load %arg1[%c0, %c0_0] : memref<2x32xf32, #tpu.memory_space<vmem>>, vector<2x32xf32>
    %1 = arith.truncf %0 : vector<2x32xf32> to vector<2x32xbf16>
    %c0_1 = arith.constant 0 : index
    %c0_2 = arith.constant 0 : index
    %2 = vector.load %arg2[%c0_1, %c0_2] : memref<32x256xbf16, #tpu.memory_space<vmem>>, vector<32x256xbf16>
    %cst = arith.constant dense<0.000000e+00> : vector<2x256xf32>
    %3 = tpu.matmul %1, %2, %cst {dimension_numbers = #tpu.dot_dimension_numbers<[1], [0], [0], [1], [0, 0, 1, 1], [], []>} : vector<2x32xbf16>, vector<32x256xbf16>, vector<2x256xf32> -> vector<2x256xf32>
    %c0_3 = arith.constant 0 : index
    %c0_4 = arith.constant 0 : index
    %4 = vector.load %arg3[%c0_3, %c0_4] : memref<2x256xf32, #tpu.memory_space<vmem>>, vector<2x256xf32>
    tpu.vector_store %arg3[%c0_3, %c0_4], %3 {strides = array<i32>} : memref<2x256xf32, #tpu.memory_space<vmem>>, vector<2x256xf32>,
    return
  }
  func.func @transform_0(%arg0: i32) -> (i32, i32) {
    %c0_i32 = arith.constant 0 : i32
    %c0_i32_0 = arith.constant 0 : i32
    %c0_i32_1 = arith.constant 0 : i32
    return %c0_i32, %c0_i32_0 : i32, i32
  }
  func.func @transform_1(%arg0: i32) -> (i32, i32) {
    %c0_i32 = arith.constant 0 : i32
    %c0_i32_0 = arith.constant 0 : i32
    return %c0_i32, %arg0 : i32, i32
  }
  func.func @transform_2(%arg0: i32) -> (i32, i32) {
    %c0_i32 = arith.constant 0 : i32
    %c0_i32_0 = arith.constant 0 : i32
    return %c0_i32, %arg0 : i32, i32
  }
}

</mosaic_0001>

<bundles_post_ra>
// kernel: step.5
= control target key start
LH: loop header
LB: loop body
LE: loop exit
PB: predicated region body
PF: predicated region fallthrough
CT: control target
= control target key end

     0   :  { %s430_s9 = smov 0   ;;  %s432_s10 = smov 0   ;;  %s485_s0 = inlined_call_operand.vmem [shape: f32[2,32], index: 0, kind: input, shape index: {}]   ;;  %s486_s1 = inlined_call_operand.vmem [shape: bf16[32,512], index: 1, kind: input, shape index: {}]   ;;  %s487_s2 = inlined_call_operand.vmem [shape: f32[2,512], index: 2, kind: output, shape index: {}]  }
   0x1   :  { %s434_s11 = smov 0  }
   0x2 LB: > { %s339_s12 = sadd.s32 4294967295, %s412_s11   ;;  %s447_s13 = sadd.s32 1, %s412_s11   ;;  %s412_s11 = sphi %s434_s11, %s490_s11   ;;  %s408_s10 = sphi %s432_s10, %s489_s10   ;;  %s404_s9 = sphi %s430_s9, %s488_s9  }
   0x3   : > { %s37_s14 = ssub.s32 %s412_s11, %s447_s13  ;;  %s40_s15 = sadd.s32 1, %s408_s10 }
   0x4   : > { %p38_p0 = scmp.eq.s32.totalorder %s37_s14, 0  ;;  %p47_p1 = scmp.ne.s32.totalorder %s408_s10, %s404_s9 }
   0x5   : > { %p48_p2 = scmp.eq.s32.totalorder %s412_s11, 0  ;;  %p342_p4 = scmp.ge.s32.totalorder %s412_s11, 2 }
   0x6   : > { %s456_s16 = scalar_select %p38_p0, %s408_s10, %s40_s15  }
   0x7   : > { %p49_p3 = por %p48_p2, %p47_p1  ;;  %102 = sbr.rel (%p342_p4) target bundleno = 21 (0x15), region = 20 }
   0xe   : > { %105 = sbr.rel (!%p49_p3) target bundleno = 21 (0x15), region = 24  ;;  %s107_s17 = sand.u32 (%p49_p3), 1, %s408_s10  }
   0xf   : > { %s358_s18 = sshll.u32 (%p49_p3), %s412_s11, 3  ;;  %s343_s19 = sshll.u32 (%p49_p3), %s107_s17, 5 }
  0x10   : > { %s112_s22 = scalar_lea.vmem (%p49_p3), %s486_s1, %s358_s18  ;;  %s109_s23 = scalar_lea.vmem (%p49_p3), [#allocation2], %s343_s19 }
  0x11   : > { %v146_v0 = vld [vmem:[%s112_s22] sm:$0xff] (%p49_p3)  ;;  %v148_v1 = vld [vmem:[%s112_s22 + $0x10] sm:$0xff] (%p49_p3) }
  0x12   : > { %v150_v2 = vld [vmem:[%s112_s22 + $0x20] sm:$0xff] (%p49_p3)  ;;  %147 = vst [vmem:[%s109_s23] sm:$0xff] (%p49_p3), %v146_v0  ;;  %149 = vst [vmem:[%s109_s23 + $0x8] sm:$0xff] (%p49_p3), %v148_v1  ;;  %v152_v3 = vld [vmem:[%s112_s22 + $0x30] sm:$0xff] (%p49_p3) }
  0x13   : > { %151 = vst [vmem:[%s109_s23 + $0x10] sm:$0xff] (%p49_p3), %v150_v2  ;;  %153 = vst [vmem:[%s109_s23 + $0x18] sm:$0xff] (%p49_p3), %v152_v3 }
  0x15 PF: > { %p346_p5 = scmp.ge.s32.totalorder %s412_s11, 1  ;;  %p158_p6 = scmp.lt.s32.totalorder %s412_s11, 3 }
  0x17   : > { %p159_p7 = pnand %p346_p5, %p158_p6 }
  0x18   : > { %s165_s24 = sand.u32 (!%p159_p7), 1, %s404_s9   ;;  %v414_v4 = vmov (!%p159_p7), 0   ;;  %v194_v9 = vld [vmem:[%s485_s0] sm:$0x3] (!%p159_p7)  ;;  %vm220_vm0 = vcmask (!%p159_p7), 261120   ;;  %s348_s29 = sshll.u32 (!%p159_p7), %s339_s12, 1 }
  0x19   : > { %162 = sbr.rel (%p159_p7) target bundleno = 252 (0xfc), region = 62  ;;  %s347_s25 = sshll.u32 (!%p159_p7), %s165_s24, 5  ;;  %256 = vmatprep.mubr.bf16.mxu0 (!%p159_p7), %v414_v4  ;;  %v195_v10 = vpack.c.bf16 (!%p159_p7), %v194_v9, %v194_v9 }
  0x1a   : > { %s167_s26 = scalar_lea.vmem (!%p159_p7), [#allocation2], %s347_s25  ;;  %p188_p8 = scmp.lt.s32.totalorder (!%p159_p7), %s348_s29, 3 }
  0x1b   : > { %v384_v5 = vld [vmem:[%s167_s26 + $0x4] ss:$8 sps:$4 sm:$0xff] (!%p159_p7)   ;;  %v386_v6 = vld [vmem:[%s167_s26] ss:$8 sps:$4 sm:$0xff] (!%p159_p7)   ;;  %v387_v7 = vld [vmem:[%s167_s26 + $0x14] ss:$8 sps:$4 sm:$0xff] (!%p159_p7)  }
  0x1c   : > { %224 = vmatprep.subr.bf16.mxu0 (!%p159_p7), %v384_v5  ;;  %v389_v8 = vld [vmem:[%s167_s26 + $0x10] ss:$8 sps:$4 sm:$0xff] (!%p159_p7)  }
  0x1d   : > { %225 = vmatpush1.bf16.msra.mxu0 (!%p159_p7), %v386_v6 }
  0x1e   : > { %226 = vmatprep.subr.bf16.mxu0 (!%p159_p7), %v387_v7 }
  0x20   : > { %s492_s29 = smov (!%p188_p8, %s348_s29), 3 }
  0x21   : > { %227 = vmatpush1.bf16.msra.mxu0 %v389_v8  ;;  %s349_s30 = sshll.u32 %s492_s29, 1 }
  0x22   : > { %s191_s5 = scalar_lea.vmem %s487_s2, %s349_s30 }
  0x24   : > { %354 = vmatmul.mubr.msk.bf16.vlgmr.msra.gmra.mrb[0].mxu0 %vm220_vm0, %v195_v10 }
  0xf7   : > { %v258_v11 = vpop.f32.mrb[0].mxu0 }
  0xf8   : > { %v260_v12 = vpop.f32.mrb[1].mxu0 }
  0xf9   : > { %v267_v13 = vcombine.low %v258_v11, %v260_v12  ;;  %v262_v14 = vpop.f32.mrb[2].mxu0 }
  0xfa   : > { %v263_v15 = vpop.f32.mrb[3].mxu0 }
  0xfb   : > { %355 = vst.sshfl [vmem:[%s191_s5] sm:$0x33 pattern:$0x76325410] %v267_v13 }
  0xfc PF: > { %p9_p9 = scmp.ge.s32.totalorder %s447_s13, 4   ;;  %s488_s9 = smov %s408_s10 }
  0xfd   : > { %s489_s10 = smov %s456_s16  ;;  %s490_s11 = smov %s447_s13 }
  0xfe   :  { %11 = sbr.rel (!%p9_p9) target bundleno = 2 (0x2), region = 101 }

// kernel: step.3
= control target key start
LH: loop header
LB: loop body
LE: loop exit
PB: predicated region body
PF: predicated region fallthrough
CT: control target
= control target key end

     0   :  { %s3094_s0 = inlined_call_operand.vmem [shape: f32[2,32], index: 0, kind: input, shape index: {}]   ;;  %s3095_s1 = inlined_call_operand.vmem [shape: f32[2,8], index: 1, kind: input, shape index: {}]   ;;  %s3096_s2 = inlined_call_operand.vmem [shape: f32[2,4,8,8], index: 2, kind: input, shape index: {}]   ;;  %s3097_s3 = inlined_call_operand.vmem [shape: f32[2,4,8,8], index: 3, kind: input, shape index: {}]   ;;  %s3098_s4 = inlined_call_operand.vmem [shape: f32[2,4,2,8], index: 4, kind: input, shape index: {}]   ;;  %s3099_s5 = inlined_call_operand.vmem [shape: f32[2,4,2,8], index: 5, kind: input, shape index: {}]   ;;  %s3100_s6 = inlined_call_operand.vmem [shape: bf16[32,96], index: 6, kind: input, shape index: {}]   ;;  %s3101_s7 = inlined_call_operand.vmem [shape: f32[1,96], index: 7, kind: input, shape index: {}]   ;;  %s3102_s8 = inlined_call_operand.vmem [shape: bf16[32,32], index: 8, kind: input, shape index: {}]   ;;  %s3103_s9 = inlined_call_operand.vmem [shape: f32[1,32], index: 9, kind: input, shape index: {}, may-alias: {9,11,13,15,17,21,23}]   ;;  %s3104_s10 = inlined_call_operand.vmem [shape: f32[1,32], index: 10, kind: input, shape index: {}, may-alias: {10,16,22}]   ;;  %s3105_s11 = inlined_call_operand.vmem [shape: f32[1,32], index: 11, kind: input, shape index: {}, may-alias: {9,11,13,15,17,21,23}]   ;;  %s3106_s12 = inlined_call_operand.vmem [shape: bf16[32,32], index: 12, kind: input, shape index: {}]   ;;  %s3107_s13 = inlined_call_operand.vmem [shape: f32[1,32], index: 13, kind: input, shape index: {}, may-alias: {9,11,13,15,17,21,23}]   ;;  %s3108_s14 = inlined_call_operand.vmem [shape: bf16[32,32], index: 14, kind: input, shape index: {}]   ;;  %s3109_s15 = inlined_call_operand.vmem [shape: f32[1,32], index: 15, kind: input, shape index: {}, may-alias: {9,11,13,15,17,21,23}]   ;;  %s3110_s16 = inlined_call_operand.vmem [shape: f32[1,32], index: 16, kind: input, shape index: {}, may-alias: {10,16,22}]   ;;  %s3111_s17 = inlined_call_operand.vmem [shape: f32[1,32], index: 17, kind: input, shape index: {}, may-alias: {9,11,13,15,17,21,23}]   ;;  %s3112_s18 = inlined_call_operand.vmem [shape: bf16[32,64], index: 18, kind: input, shape index: {}]   ;;  %s3113_s19 = inlined_call_operand.vmem [shape: f32[1,64], index: 19, kind: input, shape index: {}]   ;;  %s3114_s20 = inlined_call_operand.vmem [shape: bf16[64,32], index: 20, kind: input, shape index: {}]   ;;  %s3115_s21 = inlined_call_operand.vmem [shape: f32[1,32], index: 21, kind: input, shape index: {}, may-alias: {9,11,13,15,17,21,23}]   ;;  %s3116_s22 = inlined_call_operand.vmem [shape: f32[1,32], index: 22, kind: input, shape index: {}, may-alias: {10,16,22}]   ;;  %s3117_s23 = inlined_call_operand.vmem [shape: f32[1,32], index: 23, kind: input, shape index: {}, may-alias: {9,11,13,15,17,21,23}]   ;;  %s3118_s24 = inlined_call_operand.vmem [shape: f32[2,32], index: 24, kind: output, shape index: {0}]   ;;  %s3119_s25 = inlined_call_operand.vmem [shape: f32[2,32], index: 25, kind: output, shape index: {1}]   ;;  %s3120_s26 = inlined_call_operand.vmem [shape: f32[2,32], index: 26, kind: output, shape index: {2}]   ;;  %s3121_s27 = inlined_call_operand.hbm [shape: f32[2,8], index: 27, kind: output, shape index: {3}]  }
   0x1   :  { %3130 = sst [smem:[#allocation9_spill]] %s3094_s0 }
   0x2   :  { %3131 = sst [smem:[#allocation10_spill]] %s3095_s1 }
   0x3   :  { %3132 = sst [smem:[#allocation11_spill]] %s3096_s2 }
   0x4   :  { %3133 = sst [smem:[#allocation12_spill]] %s3097_s3 }
   0x5   :  { %3134 = sst [smem:[#allocation13_spill]] %s3098_s4 }
   0x6   :  { %3135 = sst [smem:[#allocation14_spill]] %s3099_s5 }
   0x7   :  { %3136 = sst [smem:[#allocation15_spill]] %s3100_s6 }
   0x8   :  { %3137 = sst [smem:[#allocation16_spill]] %s3101_s7 }
   0x9   :  { %3138 = sst [smem:[#allocation17_spill]] %s3102_s8 }
   0xa   :  { %3139 = sst [smem:[#allocation18_spill]] %s3103_s9 }
   0xb   :  { %3140 = sst [smem:[#allocation19_spill]] %s3104_s10 }
   0xc   :  { %3141 = sst [smem:[#allocation20_spill]] %s3105_s11 }
   0xd   :  { %s3142_s8 = sld [smem:[#allocation15_spill]]  ;;  %v2309_v1 = vmov 0.0   ;;  %vm2310_vm0 = vmmov 0   ;;  %s3143_s0 = sld [smem:[#allocation9_spill]]  ;;  %vm108_vm1 = vcmask 261120  }
   0xe   :  { %2139 = vmatprep.subr.bf16.mxu0 %v2309_v1  ;;  %2147 = vmatprep.subr.bf16.mxu1 %v2309_v1  ;;  %s3144_s1 = sld [smem:[#allocation13_spill]]  ;;  %s2311_s6 = smov 8  }
   0xf   :  { %2143 = vmatprep.mubr.msk.bf16.mxu0 %vm2310_vm0, %v2309_v1  ;;  %s2312_s3 = smov 16   ;;  %2151 = vmatprep.mubr.msk.bf16.mxu1 %vm2310_vm0, %v2309_v1  ;;  %s2313_s10 = smov 24  }
  0x13   :  { %v2209_v0 = vld [vmem:[%s3142_s8] sm:$0xff]   ;;  %v2210_v2 = vld [vmem:[%s3142_s8 + $0x8] sm:$0xff]  }
  0x14   :  { %2140 = vmatpush3.bf16.msra.mxu0 %v2209_v0  ;;  %v2478_v3 = vld [vmem:[%s3143_s0] sm:$0x3]  ;;  %v2067_v4 = vld [vmem:[%s3144_s1 + $0x2] sm:$0x3]  ;;  %v2071_v5 = vld [vmem:[%s3144_s1 + $0x4] sm:$0x3] }
  0x15   :  { %2141 = vmatprep.subr.bf16.mxu0 %v2309_v1  ;;  %370 = vrot.lane.b32.xlu0 %v2067_v4, %s2311_s6  ;;  %v2068_v6 = vld [vmem:[%s3144_s1 + $0xa] sm:$0x3]  ;;  %v84_v7 = vpack.c.bf16 %v2478_v3, %v2478_v3  ;;  %v2072_v8 = vld [vmem:[%s3144_s1 + $0xc] sm:$0x3]  ;;  %v2075_v9 = vld [vmem:[%s3144_s1 + $0x6] sm:$0x3] }
  0x16   :  { %550 = vrot.lane.b32.xlu1 %v2071_v5, %s2312_s3  ;;  %v2076_v10 = vld [vmem:[%s3144_s1 + $0xe] sm:$0x3] }
  0x18   :  { %2142 = vmatpush3.bf16.msra.mxu0 %v2210_v2 }
  0x19   :  { %372 = vrot.lane.b32.xlu0 %v2068_v6, %s2311_s6  ;;  %2155 = vmatprep.subr.bf16.mxu0 %v2309_v1 }
  0x1a   :  { %552 = vrot.lane.b32.xlu1 %v2072_v8, %s2312_s3 }
  0x1b   :  { %2144 = vmatmul.mubr.msk.bf16.vlgmr.msra.gmra.mrb[0].mxu0 %vm108_vm1, %v84_v7 }
  0x1c   :  { %2159 = vmatprep.mubr.msk.bf16.mxu0 %vm2310_vm0, %v2309_v1 }
  0x1d   :  { %730 = vrot.lane.b32.xlu0 %v2075_v9, %s2313_s10 }
  0x1e   :  { %732 = vrot.lane.b32.xlu1 %v2076_v10, %s2313_s10 }
  0x1f   :  { %33 = vsyncpa [#allocation7], 0  ;;  %s3145_s2 = sld [smem:[#allocation16_spill]]  ;;  %vm152_vm2 = vcmask 779264   ;;  %v2314_v15 = vmov 1966171168   ;;  %v177_v17 = vlaneseq }
  0x20   :  { %v175_v16 = vunpack.c.l.s4 %v2314_v15  ;;  %s3129_s7 = smov 96   ;;  %s2316_s4 = smov 120   ;;  %vm208_vm3 = vcmask 58368   ;;  %vm235_vm4 = vcmask 1041409   ;;  %vm238_vm5 = vcmask 9216  }
  0x21   :  { %v2517_v21 = vshrl.u32 %v177_v17, 7  ;;  %s2317_s8 = smov 112   ;;  %s2318_s30 = smov 104   ;;  %vm505_vm6 = vcmask 123968   ;;  %vm685_vm7 = vcmask 189568   ;;  %vm865_vm8 = vcmask 255168  }
  0x22   :  { %v176_v20 = vunpack.c.0.s8 %v175_v16  ;;  %s2321_s29 = smov 40   ;;  %s2322_s11 = smov 48   ;;  %vm159_vm9 = vcmask 254976   ;;  %vm1078_vm10 = vcmask 64512   ;;  %vm1962_vm12 = vcmask 523264  }
  0x23   :  { %v2540_v30 = vsub.s32 0, %v2517_v21  ;;  %s3146_s28 = sld [smem:[#allocation14_spill]]  ;;  %s3150_s9 = sld [smem:[#allocation19_spill]] }
  0x24   :  { %v2520_v22 = vsub.s32 %v176_v20, %v2517_v21  ;;  %s3151_s0 = sld [smem:[#allocation20_spill]] }
  0x25   :  { %v2063_v11 = vld [vmem:[%s3145_s2] ss:$0 sm:$0xff]  ;;  %s3128_s2 = smov 64  }
  0x87   :  { %v371_v29 = vpop.permute.xlu0 %370 }
  0x88   :  { %v551_v34 = vpop.permute.xlu1 %550 }
  0x8b   :  { %v373_v43 = vpop.permute.xlu0 %372 }
  0x8c   :  { %v553_v48 = vpop.permute.xlu1 %552 }
  0x8f   :  { %v731_v54 = vpop.permute.xlu0 %730 }
  0x90   :  { %v733_v57 = vpop.permute.xlu1 %732 }
  0xee   :  { %v146_v12 = vpop.f32.mrb[0].mxu0 }
  0xef   :  { %v147_v13 = vadd.f32 %v2063_v11, %v146_v12  ;;  %v2145_v14 = vpop.f32.mrb[1].mxu0 }
  0xf0   :  { %v149_v18 = vpop.f32.mrb[2].mxu0 }
  0xf1   :  { %153 = vst.msk [vmem:[#allocation2] sm:$0x3] %vm152_vm2, %v147_v13  ;;  %v2146_v19 = vpop.f32.mrb[3].mxu0 }
  0xf8   :  { %v2522_v23 = vld [vmem:[#allocation2] sm:$0x3] }
  0xf9   :  { %v2524_v24 = vld [vmem:[#allocation2] sm:$0x3]  ;;  %v2529_v26 = vmul.f32 0.35355338, %v2522_v23  ;;  %393 = vrot.lane.b32.xlu0 %v2522_v23, %s3129_s7 }
  0xfa   :  { %v2526_v25 = vld [vmem:[#allocation2] sm:$0x3]  ;;  %573 = vrot.lane.b32.xlu1 %v2524_v24, %s3129_s7  ;;  %v508_v27 = vmul.f32 0.35355338, %v2524_v24 }
  0xfb   :  { %v2537_v28 = vmul.f32 0.35355338, %v2526_v25  ;;  %v342_v31 = vrot.slane %v2529_v26, %v2520_v22  ;;  %v2574_v11 = vld [vmem:[#allocation2] sm:$0x3] }
  0xfc   :  { %v522_v32 = vrot.slane %v508_v27, %v2520_v22  ;;  %v2577_v12 = vmul.f32 0.35355338, %v2574_v11 }
  0xfd   :  { %v702_v33 = vrot.slane %v2537_v28, %v2520_v22  ;;  %v350_v35 = vrot.slane %v342_v31, %v2520_v22  ;;  %v343_v37 = vcombine.high %v342_v31, %v342_v31  ;;  %753 = vrot.lane.b32.xlu0 %v2526_v25, %s3129_s7 }
  0xfe   :  { %v530_v36 = vrot.slane %v522_v32, %v2520_v22  ;;  %v523_v38 = vcombine.high %v522_v32, %v522_v32  ;;  %v180_v14 = vrot.slane %v2577_v12, %v2520_v22 }
  0xff   :  { %v361_v39 = vrot.slane %v350_v35, %v2540_v30  ;;  %v357_v40 = vrot.slane %v343_v37, %v2520_v22  ;;  %v703_v42 = vcombine.high %v702_v33, %v702_v33  ;;  %v710_v47 = vrot.slane %v702_v33, %v2520_v22  ;;  %v170_v35 = vld [vmem:[%s3144_s1 + $0x8] sm:$0x3] }
 0x100   :  { %v537_v41 = vrot.slane %v523_v38, %v2520_v22  ;;  %v541_v45 = vrot.slane %v530_v36, %v2540_v30  ;;  %v188_v16 = vrot.slane %v180_v14, %v2520_v22  ;;  %v181_v32 = vcombine.high %v180_v14, %v180_v14 }
 0x101   :  { %v376_v44 = vmul.f32 %v371_v29, %v361_v39  ;;  %v365_v46 = vrot.slane %v357_v40, %v2540_v30  ;;  %v717_v51 = vrot.slane %v703_v42, %v2520_v22  ;;  %v721_v53 = vrot.slane %v710_v47, %v2540_v30 }
 0x102   :  { %v545_v50 = vrot.slane %v537_v41, %v2540_v30  ;;  %v556_v52 = vmul.f32 %v551_v34, %v541_v45  ;;  %v199_v20 = vrot.slane %v188_v16, %v2540_v30  ;;  %v195_v33 = vrot.slane %v181_v32, %v2520_v22 }
 0x103   :  { %v377_v49 = vmul.f32 %v373_v43, %v365_v46  ;;  %380 = vrot.lane.b32.xlu0 %v376_v44, %s2316_s4  ;;  %v725_v56 = vrot.slane %v717_v51, %v2540_v30  ;;  %v736_v58 = vmul.f32 %v731_v54, %v721_v53  ;;  %v226_v39 = vand.u32 127, %v177_v17 }
 0x104   :  { %v557_v55 = vmul.f32 %v553_v48, %v545_v50  ;;  %v203_v34 = vrot.slane %v195_v33, %v2540_v30  ;;  %v2319_v50 = vmov 0   ;;  %v2639_v14 = vsub.s32 1, %v2517_v21 }
 0x105   :  { %382 = vrot.lane.b32.xlu1 %v377_v49, %s2316_s4  ;;  %v737_v59 = vmul.f32 %v733_v57, %v725_v56  ;;  %v2605_v42 = vsub.s32 %v226_v39, %v2517_v21  ;;  %2208 = vset.pattern.permute.xlu0 %v2319_v50 }
 0x106   :  { %v207_v36 = vmul.f32 %v203_v34, %v170_v35  ;;  %2207 = vset.pattern.permute.xlu1 %v2319_v50 }
 0x107   :  { %560 = vrot.lane.b32.xlu0 %v556_v52, %s2317_s8 }
 0x108   :  { %v212_v37 = vsel %vm208_vm3, %v207_v36, 0.0 }
 0x109   :  { %562 = vrot.lane.b32.xlu1 %v557_v55, %s2317_s8 }
 0x10b   :  { %740 = vrot.lane.b32.xlu0 %v736_v58, %s2318_s30 }
 0x10d   :  { %742 = vrot.lane.b32.xlu1 %v737_v59, %s2318_s30 }
 0x16b   :  { %v394_v60 = vpop.permute.xlu0 %393 }
 0x16c   :  { %v574_v4 = vpop.permute.xlu1 %573  ;;  %v396_v10 = vmul.f32 %v394_v60, %v2529_v26  ;;  %v169_v26 = vld [vmem:[%s3144_s1] sm:$0x3]  ;;  %s2320_s1 = smov 56  }
 0x16d   :  { %v576_v9 = vmul.f32 %v574_v4, %v508_v27  ;;  %v206_v27 = vmul.f32 %v199_v20, %v169_v26 }
 0x16f   :  { %v754_v61 = vpop.permute.xlu0 %753  ;;  %v209_v29 = vsel %vm208_vm3, %v206_v27, 0.0 }
 0x170   :  { %v756_v31 = vmul.f32 %v754_v61, %v2537_v28 }
 0x175   :  { %v381_v62 = vpop.permute.xlu0 %380 }
 0x176   :  { %v386_v63 = vsel %vm208_vm3, %v381_v62, 0.0 }
 0x177   :  { %387 = vadd.xlane.f32.xlu1 %v386_v63  ;;  %v383_v7 = vpop.permute.xlu1 %382 }
 0x178   :  { %v389_v8 = vsel %vm208_vm3, %v383_v7, 0.0 }
 0x179   :  { %v561_v0 = vpop.permute.xlu0 %560 }
 0x17a   :  { %v566_v2 = vsel %vm208_vm3, %v561_v0, 0.0 }
 0x17b   :  { %567 = vadd.xlane.f32.xlu0 %v566_v2  ;;  %v563_v13 = vpop.permute.xlu1 %562 }
 0x17c   :  { %v569_v15 = vsel %vm208_vm3, %v563_v13, 0.0 }
 0x17d   :  { %v741_v5 = vpop.permute.xlu0 %740 }
 0x17e   :  { %v746_v6 = vsel %vm208_vm3, %v741_v5, 0.0 }
 0x17f   :  { %747 = vadd.xlane.f32.xlu0 %v746_v6  ;;  %v743_v18 = vpop.permute.xlu1 %742 }
 0x180   :  { %v749_v19 = vsel %vm208_vm3, %v743_v18, 0.0 }
 0x183   :  { %390 = vadd.xlane.f32.xlu0 %v389_v8 }
 0x188   :  { %578 = vrot.lane.b32.xlu1 %v576_v9, %s2317_s8 }
 0x199   :  { %398 = vrot.lane.b32.xlu0 %v396_v10, %s2316_s4 }
 0x1ac   :  { %570 = vadd.xlane.f32.xlu1 %v569_v15 }
 0x1b0   :  { %750 = vadd.xlane.f32.xlu1 %v749_v19 }
 0x1b8   :  { %210 = vadd.xlane.f32.xlu0 %v209_v29 }
 0x1c1   :  { %758 = vrot.lane.b32.xlu1 %v756_v31, %s2318_s30 }
 0x1ce   :  { %216 = vrot.lane.b32.xlu0 %v2574_v11, %s3129_s7 }
 0x1e5   :  { %213 = vadd.xlane.f32.xlu1 %v212_v37 }
 0x204   :  { %v388_v40 = vpop.xlane.xlu1 %387 }
 0x205   :  { %v409_v47 = vrot.slane %v388_v40, %v2605_v42 }
 0x208   :  { %v2599_v38 = vpop.xlane.xlu0 %567  ;;  %v579_v45 = vpop.permute.xlu1 %578 }
 0x209   :  { %v581_v48 = vsel %vm208_vm3, %v579_v45, 0.0  ;;  %v589_v52 = vrot.slane %v2599_v38, %v2605_v42 }
 0x20c   :  { %v2601_v28 = vpop.xlane.xlu0 %747 }
 0x20d   :  { %v769_v57 = vrot.slane %v2601_v28, %v2605_v42 }
 0x210   :  { %v391_v41 = vpop.xlane.xlu0 %390 }
 0x211   :  { %v413_v46 = vrot.slane %v391_v41, %v2605_v42 }
 0x213   :  { %v414_v17 = vsel %vm235_vm4, %v413_v46, %v409_v47 }
 0x214   :  { %v399_v43 = vpop.permute.xlu0 %398  ;;  %v416_v49 = vsel %vm238_vm5, %v414_v17, -inf }
 0x215   :  { %v401_v44 = vsel %vm208_vm3, %v399_v43, 0.0 }
 0x216   :  { %402 = vadd.xlane.f32.xlu1 %v401_v44 }
 0x21a   :  { %582 = vadd.xlane.f32.xlu1 %v581_v48 }
 0x21e   :  { %417 = vmax.xlane.f32.xlu1 %v416_v49 }
 0x239   :  { %v2613_v51 = vpop.xlane.xlu1 %570 }
 0x23a   :  { %v593_v53 = vrot.slane %v2613_v51, %v2605_v42 }
 0x23c   :  { %v594_v54 = vsel %vm235_vm4, %v593_v53, %v589_v52 }
 0x23d   :  { %v2620_v55 = vpop.xlane.xlu1 %750  ;;  %v596_v56 = vsel %vm238_vm5, %v594_v54, -inf }
 0x23e   :  { %v773_v58 = vrot.slane %v2620_v55, %v2605_v42  ;;  %597 = vmax.xlane.f32.xlu1 %v596_v56 }
 0x240   :  { %v774_v59 = vsel %vm235_vm4, %v773_v58, %v769_v57 }
 0x241   :  { %v759_v60 = vpop.permute.xlu1 %758  ;;  %v776_v61 = vsel %vm238_vm5, %v774_v59, -inf }
 0x242   :  { %777 = vmax.xlane.f32.xlu0 %v776_v61  ;;  %v761_v62 = vsel %vm208_vm3, %v759_v60, 0.0 }
 0x243   :  { %762 = vadd.xlane.f32.xlu1 %v761_v62 }
 0x245   :  { %v211_v63 = vpop.xlane.xlu0 %210 }
 0x246   :  { %v230_v6 = vrot.slane %v211_v63, %v2605_v42 }
 0x249   :  { %v217_v0 = vpop.permute.xlu0 %216 }
 0x24a   :  { %v219_v2 = vmul.f32 %v217_v0, %v2577_v12 }
 0x24c   :  { %v220_v4 = vsel %vm208_vm3, %v219_v2, 0.0 }
 0x24d   :  { %221 = vadd.xlane.f32.xlu1 %v220_v4 }
 0x272   :  { %v214_v5 = vpop.xlane.xlu1 %213 }
 0x273   :  { %v234_v7 = vrot.slane %v214_v5, %v2605_v42 }
 0x275   :  { %v236_v8 = vsel %vm235_vm4, %v234_v7, %v230_v6 }
 0x276   :  { %v239_v9 = vsel %vm238_vm5, %v236_v8, -inf }
 0x277   :  { %240 = vmax.xlane.f32.xlu1 %v239_v9 }
 0x2a3   :  { %v403_v10 = vpop.xlane.xlu1 %402 }
 0x2a7   :  { %v2636_v13 = vpop.xlane.xlu1 %582 }
 0x2ab   :  { %v418_v12 = vpop.xlane.xlu1 %417 }
 0x2ac   :  { %v419_v15 = vmax.f32 %v418_v12, %v403_v10 }
 0x2ae   :  { %v424_v16 = vrot.slane %v419_v15, %v2540_v30  ;;  %v428_v18 = vrot.slane %v419_v15, %v2639_v14  ;;  %v437_v53 = vsub.f32 %v403_v10, %v419_v15 }
 0x2b0   :  { %v431_v19 = vsub.f32 %v388_v40, %v424_v16  ;;  %v432_v20 = vsub.f32 %v391_v41, %v428_v18  ;;  %v438_v58 = vmul.f32 1.442695, %v437_v53 }
 0x2b2   :  { %v433_v26 = vmul.f32 1.442695, %v431_v19  ;;  %v435_v27 = vmul.f32 1.442695, %v432_v20 }
 0x2b4   :  { %2223 = vpow2.f32 %v433_v26 }
 0x2b5   :  { %2225 = vpow2.f32 %v435_v27 }
 0x2be   :  { %v2224_v29 = vpop.eup %2223 }
 0x2bf   :  { %443 = vperm.xlu1 %2207, %v2224_v29   ;;  %v2226_v31 = vpop.eup %2225 }
 0x2c3   :  { %446 = vperm.xlu1 %2207, %v2226_v31  }
 0x2cb   :  { %v598_v32 = vpop.xlane.xlu1 %597 }
 0x2cc   :  { %v599_v21 = vmax.f32 %v598_v32, %v2636_v13 }
 0x2ce   :  { %v604_v33 = vrot.slane %v599_v21, %v2540_v30 }
 0x2cf   :  { %v778_v43 = vpop.xlane.xlu0 %777 }
 0x2d0   :  { %v611_v34 = vsub.f32 %v2599_v38, %v604_v33  ;;  %v763_v37 = vpop.xlane.xlu1 %762  ;;  %v608_v38 = vrot.slane %v599_v21, %v2639_v14 }
 0x2d1   :  { %v779_v46 = vmax.f32 %v778_v43, %v763_v37 }
 0x2d2   :  { %v613_v35 = vmul.f32 1.442695, %v611_v34  ;;  %v612_v49 = vsub.f32 %v2613_v51, %v608_v38 }
 0x2d3   :  { %v784_v50 = vrot.slane %v779_v46, %v2540_v30  ;;  %v788_v56 = vrot.slane %v779_v46, %v2639_v14  ;;  %v797_v8 = vsub.f32 %v763_v37, %v779_v46 }
 0x2d4   :  { %2227 = vpow2.f32 %v613_v35  ;;  %v615_v54 = vmul.f32 1.442695, %v612_v49  ;;  %v2070_v49 = vld [vmem:[%s3146_s28 + $0xa] sm:$0x3] }
 0x2d5   :  { %v791_v57 = vsub.f32 %v2601_v28, %v784_v50  ;;  %v792_v59 = vsub.f32 %v2620_v55, %v788_v56  ;;  %v798_v12 = vmul.f32 1.442695, %v797_v8  ;;  %v2069_v50 = vld [vmem:[%s3146_s28 + $0x2] sm:$0x3] }
 0x2d7   :  { %v793_v60 = vmul.f32 1.442695, %v791_v57  ;;  %v795_v51 = vmul.f32 1.442695, %v792_v59 }
 0x2da   :  { %v2646_v39 = vpop.xlane.xlu1 %221 }
 0x2de   :  { %v2228_v36 = vpop.eup %2227 }
 0x2df   :  { %623 = vperm.xlu0 %2208, %v2228_v36  }
 0x304   :  { %v241_v40 = vpop.xlane.xlu1 %240 }
 0x305   :  { %v2649_v41 = vmax.f32 %v241_v40, %v2646_v39 }
 0x307   :  { %v247_v44 = vrot.slane %v2649_v41, %v2540_v30  ;;  %v251_v45 = vrot.slane %v2649_v41, %v2639_v14  ;;  %v260_v36 = vsub.f32 %v2646_v39, %v2649_v41 }
 0x309   :  { %v254_v47 = vsub.f32 %v211_v63, %v247_v44  ;;  %v255_v48 = vsub.f32 %v214_v5, %v251_v45  ;;  %v261_v43 = vmul.f32 1.442695, %v260_v36  ;;  %v2077_v36 = vld [vmem:[%s3146_s28 + $0x6] sm:$0x3] }
 0x30b   :  { %v256_v17 = vmul.f32 1.442695, %v254_v47  ;;  %v258_v52 = vmul.f32 1.442695, %v255_v48 }
 0x30d   :  { %2229 = vpow2.f32 %v256_v17 }
 0x30e   :  { %2231 = vpow2.f32 %v258_v52 }
 0x30f   :  { %2233 = vpow2.f32 %v615_v54 }
 0x310   :  { %2235 = vpow2.f32 %v438_v58 }
 0x311   :  { %2237 = vpow2.f32 %v793_v60 }
 0x312   :  { %2239 = vpow2.f32 %v795_v51 }
 0x313   :  { %2241 = vpow2.f32 %v798_v12 }
 0x317   :  { %v2230_v61 = vpop.eup %2229 }
 0x318   :  { %266 = vperm.xlu1 %2207, %v2230_v61   ;;  %v2232_v62 = vpop.eup %2231 }
 0x319   :  { %v2234_v63 = vpop.eup %2233 }
 0x31a   :  { %v2661_v0 = vpop.eup %2235 }
 0x31b   :  { %v2238_v2 = vpop.eup %2237  ;;  %v481_v28 = vmul.f32 %v2661_v0, %v2522_v23  ;;  %v617_v23 = vsub.f32 %v2636_v13, %v599_v21 }
 0x31c   :  { %269 = vperm.xlu1 %2207, %v2232_v62   ;;  %v2240_v4 = vpop.eup %2239 }
 0x31d   :  { %v483_v55 = vrot.slane %v481_v28, 1  ;;  %v618_v16 = vmul.f32 1.442695, %v617_v23  ;;  %v2670_v18 = vpop.eup %2241 }
 0x31e   :  { %v841_v19 = vmul.f32 %v2670_v18, %v2526_v25 }
 0x31f   :  { %2243 = vpow2.f32 %v618_v16 }
 0x320   :  { %626 = vperm.xlu1 %2207, %v2234_v63   ;;  %v843_v20 = vrot.slane %v841_v19, 1  ;;  %2245 = vpow2.f32 %v261_v43 }
 0x324   :  { %803 = vperm.xlu1 %2207, %v2238_v2  }
 0x328   :  { %806 = vperm.xlu1 %2207, %v2240_v4  }
 0x329   :  { %v2674_v26 = vpop.eup %2243 }
 0x32a   :  { %v661_v27 = vmul.f32 %v2674_v26, %v2524_v24  ;;  %v2704_v48 = vpop.eup %2245 }
 0x32b   :  { %v304_v41 = vmul.f32 %v2704_v48, %v2574_v11 }
 0x32c   :  { %486 = vrot.lane.b32.xlu1 %v483_v55, %s2320_s1  ;;  %v663_v39 = vrot.slane %v661_v27, 1 }
 0x32d   :  { %v306_v17 = vrot.slane %v304_v41, 1 }
 0x33e   :  { %v444_v5 = vpop.permute.xlu1 %443 }
 0x33f   :  { %v451_v9 = vrot.slane %v444_v5, %v2605_v42  ;;  %v465_v53 = vmul.f32 %v2069_v50, %v444_v5 }
 0x341   :  { %v467_v54 = vsel %vm208_vm3, %v465_v53, 0.0 }
 0x342   :  { %v447_v6 = vpop.permute.xlu1 %446  ;;  %v468_v57 = vrot.slane %v467_v54, 4 }
 0x343   :  { %v455_v7 = vrot.slane %v447_v6, %v2605_v42  ;;  %v466_v52 = vmul.f32 %v2070_v49, %v447_v6 }
 0x344   :  { %v469_v60 = vadd.f32 %v468_v57, %v467_v54 }
 0x345   :  { %v456_v10 = vsel %vm235_vm4, %v455_v7, %v451_v9  ;;  %v474_v11 = vsel %vm208_vm3, %v466_v52, 0.0 }
 0x346   :  { %v458_v15 = vsel %vm238_vm5, %v456_v10, 0.0  ;;  %v475_v56 = vrot.slane %v474_v11, 4  ;;  %v470_v63 = vrot.slane %v469_v60, 2 }
 0x348   :  { %v476_v58 = vadd.f32 %v475_v56, %v474_v11  ;;  %v471_v4 = vadd.f32 %v470_v63, %v469_v60 }
 0x34a   :  { %v477_v61 = vrot.slane %v476_v58, 2  ;;  %v472_v5 = vrot.slane %v471_v4, 1 }
 0x34c   :  { %v473_v10 = vadd.f32 %v472_v5, %v471_v4 }
 0x350   :  { %459 = vadd.xlane.f32.xlu1 %v458_v15 }
 0x35e   :  { %v2687_v32 = vpop.permute.xlu0 %623 }
 0x35f   :  { %v631_v24 = vrot.slane %v2687_v32, %v2605_v42 }
 0x361   :  { %484 = vrot.lane.b32.xlu1 %v481_v28, %s2320_s1  ;;  %v478_v28 = vadd.f32 %v477_v61, %v476_v58 }
 0x363   :  { %v479_v55 = vrot.slane %v478_v28, 1 }
 0x365   :  { %846 = vrot.lane.b32.xlu1 %v843_v20, %s2321_s29  ;;  %v480_v6 = vadd.f32 %v479_v55, %v478_v28  ;;  %v2074_v20 = vld [vmem:[%s3146_s28 + $0xc] sm:$0x3] }
 0x369   :  { %664 = vrot.lane.b32.xlu1 %v661_v27, %s2322_s11  ;;  %v2073_v27 = vld [vmem:[%s3146_s28 + $0x4] sm:$0x3] }
 0x397   :  { %v2679_v13 = vpop.permute.xlu1 %266 }
 0x398   :  { %v274_v31 = vrot.slane %v2679_v13, %v2605_v42 }
 0x39b   :  { %v2681_v29 = vpop.permute.xlu1 %269 }
 0x39c   :  { %v278_v25 = vrot.slane %v2681_v29, %v2605_v42 }
 0x39e   :  { %v279_v21 = vsel %vm235_vm4, %v278_v25, %v274_v31  ;;  %v645_v25 = vmul.f32 %v2073_v27, %v2687_v32 }
 0x39f   :  { %v627_v33 = vpop.permute.xlu1 %626  ;;  %v281_v2 = vsel %vm238_vm5, %v279_v21, 0.0 }
 0x3a0   :  { %v635_v34 = vrot.slane %v627_v33, %v2605_v42  ;;  %v646_v31 = vmul.f32 %v2074_v20, %v627_v33 }
 0x3a2   :  { %v636_v35 = vsel %vm235_vm4, %v635_v34, %v631_v24  ;;  %v654_v21 = vsel %vm208_vm3, %v646_v31, 0.0  ;;  %v2078_v24 = vld [vmem:[%s3146_s28 + $0xe] sm:$0x3]  ;;  %v647_v34 = vsel %vm208_vm3, %v645_v25, 0.0 }
 0x3a3   :  { %v2696_v37 = vpop.permute.xlu1 %803  ;;  %v638_v40 = vsel %vm238_vm5, %v636_v35, 0.0  ;;  %v655_v35 = vrot.slane %v654_v21, 4  ;;  %v648_v43 = vrot.slane %v647_v34, 4 }
 0x3a4   :  { %639 = vadd.xlane.f32.xlu0 %v638_v40  ;;  %v811_v45 = vrot.slane %v2696_v37, %v2605_v42 }
 0x3a5   :  { %v656_v33 = vadd.f32 %v655_v35, %v654_v21  ;;  %v172_v35 = vld [vmem:[%s3146_s28 + $0x8] sm:$0x3] }
 0x3a7   :  { %v807_v44 = vpop.permute.xlu1 %806 }
 0x3a8   :  { %v815_v38 = vrot.slane %v807_v44, %v2605_v42  ;;  %v826_v40 = vmul.f32 %v2078_v24, %v807_v44 }
 0x3aa   :  { %v816_v46 = vsel %vm235_vm4, %v815_v38, %v811_v45  ;;  %v825_v45 = vmul.f32 %v2077_v36, %v2696_v37  ;;  %v834_v32 = vsel %vm208_vm3, %v826_v40, 0.0  ;;  %v649_v38 = vadd.f32 %v648_v43, %v647_v34  ;;  %v171_v36 = vld [vmem:[%s3146_s28] sm:$0x3]  ;;  %s3149_s28 = sld [smem:[#allocation11_spill]] }
 0x3ab   :  { %v818_v47 = vsel %vm238_vm5, %v816_v46, 0.0  ;;  %v487_v59 = vpop.permute.xlu1 %486  ;;  %v289_v40 = vmul.f32 %v2681_v29, %v172_v35  ;;  %v288_v43 = vmul.f32 %v2679_v13, %v171_v36  ;;  %v2083_v36 = vld [vmem:[%s3150_s9] ss:$0 sm:$0xff] }
 0x3ac   :  { %819 = vadd.xlane.f32.xlu1 %v818_v47  ;;  %v491_v9 = vadd.f32 %v487_v59, %v480_v6  ;;  %v827_v47 = vsel %vm208_vm3, %v825_v45, 0.0  ;;  %v650_v52 = vrot.slane %v649_v38, 2 }
 0x3ad   :  { %v828_v50 = vrot.slane %v827_v47, 4  ;;  %v297_v45 = vsel %vm208_vm3, %v289_v40, 0.0 }
 0x3ae   :  { %v651_v37 = vadd.f32 %v650_v52, %v649_v38 }
 0x3af   :  { %v829_v54 = vadd.f32 %v828_v50, %v827_v47 }
 0x3b0   :  { %v652_v60 = vrot.slane %v651_v37, 1 }
 0x3b1   :  { %v830_v61 = vrot.slane %v829_v54, 2 }
 0x3b3   :  { %v831_v55 = vadd.f32 %v830_v61, %v829_v54 }
 0x3ba   :  { %666 = vrot.lane.b32.xlu0 %v663_v39, %s2322_s11  ;;  %v835_v39 = vrot.slane %v834_v32, 4 }
 0x3bc   :  { %v836_v53 = vadd.f32 %v835_v39, %v834_v32  ;;  %v298_v32 = vrot.slane %v297_v45, 4 }
 0x3bd   :  { %844 = vrot.lane.b32.xlu1 %v841_v19, %s2321_s29  ;;  %s3147_s29 = sld [smem:[#allocation17_spill]] }
 0x3be   :  { %309 = vrot.lane.b32.xlu0 %v306_v17, %s3128_s2  ;;  %v657_v17 = vrot.slane %v656_v33, 2  ;;  %v837_v56 = vrot.slane %v836_v53, 2 }
 0x3c0   :  { %v658_v11 = vadd.f32 %v657_v17, %v656_v33  ;;  %v290_v33 = vsel %vm208_vm3, %v288_v43, 0.0  ;;  %v2084_v43 = vld [vmem:[%s3151_s0] ss:$0 sm:$0xff] }
 0x3c1   :  { %v291_v38 = vrot.slane %v290_v33, 4 }
 0x3c2   :  { %307 = vrot.lane.b32.xlu0 %v304_v41, %s3128_s2  ;;  %v659_v57 = vrot.slane %v658_v11, 1 }
 0x3c3   :  { %v292_v47 = vadd.f32 %v291_v38, %v290_v33  ;;  %v2085_v38 = vld [vmem:[%s3107_s13] ss:$0 sm:$0xff]  ;;  %s3155_s13 = smov 64  }
 0x3c4   :  { %v660_v63 = vadd.f32 %v659_v57, %v658_v11 }
 0x3dd   :  { %v460_v51 = vpop.xlane.xlu1 %459 }
 0x3de   :  { %v461_v62 = vadd.f32 %v2661_v0, %v460_v51 }
 0x3e0   :  { %2247 = vrcp.f32 %v461_v62  ;;  %v838_v62 = vadd.f32 %v837_v56, %v836_v53 }
 0x3e1   :  { %282 = vadd.xlane.f32.xlu1 %v281_v2  ;;  %v485_v8 = vpop.permute.xlu1 %484  ;;  %v653_v2 = vadd.f32 %v652_v60, %v651_v37 }
 0x3e2   :  { %v490_v15 = vadd.f32 %v485_v8, %v473_v10  ;;  %v839_v5 = vrot.slane %v838_v62, 1  ;;  %v2211_v8 = vld [vmem:[%s3147_s29] sm:$0xff]  }
 0x3e3   :  { %2148 = vmatpush3.bf16.msra.mxu1 %v2211_v8 }
 0x3e4   :  { %2149 = vmatprep.subr.bf16.mxu1 %v2309_v1 }
 0x3e5   :  { %v847_v46 = vpop.permute.xlu1 %846 }
 0x3e9   :  { %v665_v44 = vpop.permute.xlu1 %664 }
 0x3ea   :  { %v2248_v7 = vpop.eup %2247  ;;  %v670_v6 = vadd.f32 %v665_v44, %v653_v2 }
 0x3eb   :  { %v493_v12 = vrot.slane %v2248_v7, 1  ;;  %v496_v16 = vmul.f32 %v2248_v7, %v490_v15  ;;  %v840_v15 = vadd.f32 %v839_v5, %v838_v62 }
 0x3ed   :  { %v497_v23 = vmul.f32 %v493_v12, %v491_v9  ;;  %v2212_v12 = vld [vmem:[%s3147_s29 + $0x8] sm:$0xff]   ;;  %s3148_s29 = sld [smem:[#allocation18_spill]] }
 0x3ee   :  { %2150 = vmatpush3.bf16.msra.mxu1 %v2212_v12 }
 0x3ef   :  { %v500_v19 = vrot.slane %v497_v23, 7  ;;  %2163 = vmatprep.subr.bf16.mxu1 %v2309_v1 }
 0x3f1   :  { %v501_v0 = vsel %vm235_vm4, %v500_v19, %v496_v16 }
 0x3f2   :  { %502 = vrot.lane.b32.xlu0 %v501_v0, %s2311_s6  ;;  %v851_v0 = vadd.f32 %v847_v46, %v840_v15  ;;  %v299_v46 = vadd.f32 %v298_v32, %v297_v45 }
 0x3f4   :  { %v300_v39 = vrot.slane %v299_v46, 2 }
 0x3f6   :  { %v301_v50 = vadd.f32 %v300_v39, %v299_v46 }
 0x3f8   :  { %v302_v29 = vrot.slane %v301_v50, 1 }
 0x3fa   :  { %v303_v13 = vadd.f32 %v302_v29, %v301_v50 }
 0x431   :  { %v640_v41 = vpop.xlane.xlu0 %639 }
 0x432   :  { %v641_v49 = vadd.f32 %v2674_v26, %v640_v41 }
 0x434   :  { %2249 = vrcp.f32 %v641_v49  ;;  %v293_v49 = vrot.slane %v292_v47, 2 }
 0x435   :  { %v667_v51 = vpop.permute.xlu0 %666 }
 0x436   :  { %v671_v4 = vadd.f32 %v667_v51, %v660_v63  ;;  %v294_v52 = vadd.f32 %v293_v49, %v292_v47 }
 0x438   :  { %v295_v44 = vrot.slane %v294_v52, 1 }
 0x439   :  { %v820_v58 = vpop.xlane.xlu1 %819  ;;  %v310_v53 = vpop.permute.xlu0 %309 }
 0x43a   :  { %v821_v59 = vadd.f32 %v2670_v18, %v820_v58  ;;  %v832_v18 = vrot.slane %v831_v55, 1  ;;  %v314_v37 = vadd.f32 %v310_v53, %v303_v13  ;;  %v296_v56 = vadd.f32 %v295_v44, %v294_v52 }
 0x43c   :  { %2251 = vrcp.f32 %v821_v59  ;;  %v833_v20 = vadd.f32 %v832_v18, %v831_v55 }
 0x43d   :  { %v845_v19 = vpop.permute.xlu1 %844  ;;  %v308_v54 = vpop.permute.xlu0 %307 }
 0x43e   :  { %v2250_v26 = vpop.eup %2249  ;;  %v850_v31 = vadd.f32 %v845_v19, %v833_v20  ;;  %v313_v58 = vadd.f32 %v308_v54, %v296_v56  ;;  %v2214_v19 = vld [vmem:[%s3106_s12 + $0x8] sm:$0xff]   ;;  %v2093_v20 = vld [vmem:[%s3149_s28 + $0x10] sm:$0xff] }
 0x43f   :  { %v673_v28 = vrot.slane %v2250_v26, 1  ;;  %v676_v10 = vmul.f32 %v2250_v26, %v670_v6 }
 0x441   :  { %v677_v7 = vmul.f32 %v673_v28, %v671_v4  ;;  %v2079_v28 = vld [vmem:[%s3148_s29] ss:$0 sm:$0xff] }
 0x443   :  { %v680_v9 = vrot.slane %v677_v7, 7 }
 0x445   :  { %v681_v23 = vsel %vm235_vm4, %v680_v9, %v676_v10 }
 0x446   :  { %v2252_v16 = vpop.eup %2251  ;;  %682 = vrot.lane.b32.xlu0 %v681_v23, %s2312_s3 }
 0x447   :  { %v853_v27 = vrot.slane %v2252_v16, 1  ;;  %v856_v21 = vmul.f32 %v2252_v16, %v850_v31  ;;  %v2213_v16 = vld [vmem:[%s3106_s12] sm:$0xff]   ;;  %v2097_v31 = vld [vmem:[%s3149_s28 + $0x18] sm:$0xff]  ;;  %s3153_s12 = sld [smem:[#allocation12_spill]] }
 0x448   :  { %2156 = vmatpush3.bf16.msra.mxu0 %v2213_v16 }
 0x449   :  { %v857_v25 = vmul.f32 %v853_v27, %v851_v0  ;;  %2157 = vmatprep.subr.bf16.mxu0 %v2309_v1  ;;  %v2090_v0 = vld [vmem:[%s3149_s28 + $0x28] sm:$0xff]  ;;  %v2094_v27 = vld [vmem:[%s3149_s28 + $0x30] sm:$0xff] }
 0x44b   :  { %v860_v24 = vrot.slane %v857_v25, 7  ;;  %v2098_v25 = vld [vmem:[%s3149_s28 + $0x38] sm:$0xff] }
 0x44c   :  { %2158 = vmatpush3.bf16.msra.mxu0 %v2214_v19 }
 0x44d   :  { %v861_v34 = vsel %vm235_vm4, %v860_v24, %v856_v21  ;;  %2171 = vmatprep.subr.bf16.mxu0 %v2309_v1 }
 0x44e   :  { %862 = vrot.lane.b32.xlu0 %v861_v34, %s2313_s10 }
 0x464   :  { %v503_v51 = vpop.permute.xlu0 %502 }
 0x46e   :  { %v283_v41 = vpop.xlane.xlu1 %282 }
 0x46f   :  { %v284_v17 = vadd.f32 %v2704_v48, %v283_v41 }
 0x471   :  { %2253 = vrcp.f32 %v284_v17 }
 0x47b   :  { %v2254_v11 = vpop.eup %2253 }
 0x47c   :  { %v316_v57 = vrot.slane %v2254_v11, 1  ;;  %v319_v60 = vmul.f32 %v2254_v11, %v313_v58 }
 0x47e   :  { %v320_v59 = vmul.f32 %v316_v57, %v314_v37 }
 0x480   :  { %v323_v61 = vrot.slane %v320_v59, 7 }
 0x482   :  { %v324_v48 = vsel %vm235_vm4, %v323_v61, %v319_v60 }
 0x483   :  { %326 = vst.msk [vmem:[#allocation4] sm:$0x3] %vm208_vm3, %v324_v48 }
 0x484   :  { %506 = vst.msk [vmem:[#allocation4] sm:$0x3] %vm505_vm6, %v503_v51 }
 0x4b8   :  { %v683_v62 = vpop.permute.xlu0 %682 }
 0x4b9   :  { %686 = vst.msk [vmem:[#allocation4] sm:$0x3] %vm685_vm7, %v683_v62 }
 0x4c0   :  { %v863_v63 = vpop.permute.xlu0 %862 }
 0x4c1   :  { %866 = vst.msk [vmem:[#allocation4] sm:$0x3] %vm865_vm8, %v863_v63 }
 0x4c8   :  { %v867_v26 = vld [vmem:[#allocation4] sm:$0x3] }
 0x4c9   :  { %v868_v2 = vpack.c.bf16 %v867_v26, %v867_v26 }
 0x4cb   :  { %2152 = vmatmul.mubr.msk.bf16.vlgmr.msra.gmra.mrb[0].mxu1 %vm108_vm1, %v868_v2 }
 0x4cc   :  { %2167 = vmatprep.mubr.msk.bf16.mxu1 %vm2310_vm0, %v2309_v1 }
 0x59e   :  { %v929_v4 = vpop.f32.mrb[0].mxu1 }
 0x59f   :  { %v930_v55 = vadd.f32 %v2079_v28, %v929_v4  ;;  %v2153_v5 = vpop.f32.mrb[1].mxu1 }
 0x5a0   :  { %v932_v6 = vpop.f32.mrb[2].mxu1 }
 0x5a1   :  { %v2154_v7 = vpop.f32.mrb[3].mxu1  ;;  %v935_v8 = vadd.f32 %v930_v55, %v2478_v3  ;;  %v2089_v3 = vld [vmem:[%s3149_s28 + $0x8] sm:$0xff] }
 0x5a3   :  { %v936_v9 = vsel %vm159_vm9, %v935_v8, 0.0 }
 0x5a4   :  { %937 = vadd.xlane.f32.xlu0 %v936_v9 }
 0x5ba   :  { %1255 = vrot.lane.b32.xlu0 %v2090_v0, %s2311_s6 }
 0x631   :  { %v938_v18 = vpop.xlane.xlu0 %937 }
 0x632   :  { %v940_v10 = vmul.f32 0.03125, %v938_v18 }
 0x634   :  { %v941_v12 = vsub.f32 %v935_v8, %v940_v10 }
 0x635   :  { %v1256_v4 = vpop.permute.xlu0 %1255 }
 0x636   :  { %v942_v15 = vmul.f32 %v941_v12, %v941_v12 }
 0x638   :  { %v943_v23 = vsel %vm159_vm9, %v942_v15, 0.0 }
 0x639   :  { %944 = vadd.xlane.f32.xlu1 %v943_v23 }
 0x64a   :  { %1253 = vrot.lane.b32.xlu1 %v2089_v3, %s2311_s6 }
 0x64e   :  { %1428 = vrot.lane.b32.xlu1 %v2093_v20, %s2312_s3 }
 0x652   :  { %1430 = vrot.lane.b32.xlu1 %v2094_v27, %s2312_s3 }
 0x656   :  { %1603 = vrot.lane.b32.xlu1 %v2097_v31, %s2313_s10 }
 0x65a   :  { %1605 = vrot.lane.b32.xlu1 %v2098_v25, %s2313_s10 }
 0x6c6   :  { %v945_v21 = vpop.xlane.xlu1 %944 }
 0x6c7   :  { %v946_v24 = vmul.f32 0.03125, %v945_v21 }
 0x6c9   :  { %v947_v34 = vadd.f32 1e-05, %v946_v24 }
 0x6ca   :  { %v1254_v49 = vpop.permute.xlu1 %1253 }
 0x6cb   :  { %2255 = vrsqrt.f32 %v947_v34 }
 0x6ce   :  { %v1429_v50 = vpop.permute.xlu1 %1428 }
 0x6d2   :  { %v1431_v59 = vpop.permute.xlu1 %1430 }
 0x6d5   :  { %v2256_v35 = vpop.eup %2255 }
 0x6d6   :  { %v949_v40 = vmul.f32 %v2256_v35, %v941_v12  ;;  %v1604_v5 = vpop.permute.xlu1 %1603 }
 0x6d8   :  { %v957_v45 = vmul.f32 %v2083_v36, %v949_v40 }
 0x6da   :  { %v2818_v33 = vadd.f32 %v2084_v43, %v957_v45  ;;  %v1606_v23 = vpop.permute.xlu1 %1605 }
 0x6dc   :  { %v966_v32 = vpack.c.bf16 %v2818_v33, %v2818_v33 }
 0x6de   :  { %2160 = vmatmul.mubr.msk.bf16.vlgmr.msra.gmra.mrb[4].mxu0 %vm108_vm1, %v966_v32 }
 0x6df   :  { %2175 = vmatprep.mubr.msk.bf16.mxu0 %vm2310_vm0, %v2309_v1 }
 0x7b1   :  { %v1027_v46 = vpop.f32.mrb[4].mxu0 }
 0x7b2   :  { %v1028_v47 = vadd.f32 %v2085_v38, %v1027_v46  ;;  %v2161_v39 = vpop.f32.mrb[5].mxu0 }
 0x7b3   :  { %v1030_v41 = vpop.f32.mrb[6].mxu0 }
 0x7b4   :  { %1033 = vst.msk [vmem:[#allocation3] sm:$0x3] %vm159_vm9, %v1028_v47  ;;  %v2162_v17 = vpop.f32.mrb[7].mxu0 }
 0x7bb   :  { %v1210_v52 = vld [vmem:[#allocation3] sm:$0x3] }
 0x7bc   :  { %v1385_v53 = vld [vmem:[#allocation3] sm:$0x3]  ;;  %v1211_v44 = vmul.f32 0.35355338, %v1210_v52 }
 0x7bd   :  { %v1560_v29 = vld [vmem:[#allocation3] sm:$0x3]  ;;  %v1386_v13 = vmul.f32 0.35355338, %v1385_v53 }
 0x7be   :  { %v1561_v11 = vmul.f32 0.35355338, %v1560_v29  ;;  %v1225_v54 = vrot.slane %v1211_v44, %v2520_v22  ;;  %v1037_v38 = vld [vmem:[#allocation3] sm:$0x3] }
 0x7bf   :  { %v1400_v37 = vrot.slane %v1386_v13, %v2520_v22  ;;  %v1038_v46 = vmul.f32 0.35355338, %v1037_v38  ;;  %v1040_v53 = vld [vmem:[%s3149_s28 + $0x20] sm:$0xff] }
 0x7c0   :  { %v1575_v56 = vrot.slane %v1561_v11, %v2520_v22  ;;  %v1233_v57 = vrot.slane %v1225_v54, %v2520_v22  ;;  %v1226_v61 = vcombine.high %v1225_v54, %v1225_v54 }
 0x7c1   :  { %v1408_v58 = vrot.slane %v1400_v37, %v2520_v22  ;;  %v1401_v60 = vcombine.high %v1400_v37, %v1400_v37  ;;  %v1050_v47 = vrot.slane %v1038_v46, %v2520_v22 }
 0x7c2   :  { %v1244_v48 = vrot.slane %v1233_v57, %v2540_v30  ;;  %v1576_v62 = vcombine.high %v1575_v56, %v1575_v56  ;;  %v1240_v63 = vrot.slane %v1226_v61, %v2520_v22  ;;  %v1583_v28 = vrot.slane %v1575_v56, %v2520_v22 }
 0x7c3   :  { %v1415_v51 = vrot.slane %v1401_v60, %v2520_v22  ;;  %v1419_v2 = vrot.slane %v1408_v58, %v2540_v30  ;;  %v1051_v39 = vcombine.high %v1050_v47, %v1050_v47  ;;  %v1058_v41 = vrot.slane %v1050_v47, %v2520_v22 }
 0x7c4   :  { %v1259_v26 = vmul.f32 %v1254_v49, %v1244_v48  ;;  %v1248_v55 = vrot.slane %v1240_v63, %v2540_v30  ;;  %v1590_v7 = vrot.slane %v1576_v62, %v2520_v22  ;;  %v1594_v18 = vrot.slane %v1583_v28, %v2540_v30 }
 0x7c5   :  { %v1423_v6 = vrot.slane %v1415_v51, %v2540_v30  ;;  %v1434_v9 = vmul.f32 %v1429_v50, %v1419_v2  ;;  %v1065_v17 = vrot.slane %v1051_v39, %v2520_v22  ;;  %v1069_v49 = vrot.slane %v1058_v41, %v2540_v30  ;;  %v1039_v50 = vld [vmem:[%s3149_s28] sm:$0xff] }
 0x7c6   :  { %1263 = vrot.lane.b32.xlu1 %v1259_v26, %s2316_s4  ;;  %v1260_v8 = vmul.f32 %v1256_v4, %v1248_v55  ;;  %v1598_v12 = vrot.slane %v1590_v7, %v2540_v30  ;;  %v1609_v15 = vmul.f32 %v1604_v5, %v1594_v18 }
 0x7c7   :  { %v1435_v10 = vmul.f32 %v1431_v59, %v1423_v6  ;;  %v1073_v52 = vrot.slane %v1065_v17, %v2540_v30  ;;  %v1076_v29 = vmul.f32 %v1069_v49, %v1039_v50 }
 0x7c8   :  { %1265 = vrot.lane.b32.xlu0 %v1260_v8, %s2316_s4  ;;  %v1610_v16 = vmul.f32 %v1606_v23, %v1598_v12 }
 0x7c9   :  { %v1077_v44 = vmul.f32 %v1073_v52, %v1040_v53  ;;  %v1079_v13 = vsel %vm1078_vm10, %v1076_v29, 0.0 }
 0x7ca   :  { %1438 = vrot.lane.b32.xlu1 %v1434_v9, %s2317_s8 }
 0x7cb   :  { %v1082_v11 = vsel %vm1078_vm10, %v1077_v44, 0.0 }
 0x7cc   :  { %1440 = vrot.lane.b32.xlu0 %v1435_v10, %s2317_s8  ;;  %s3152_s8 = sld [smem:[#allocation10_spill]] }
 0x7ce   :  { %1613 = vrot.lane.b32.xlu1 %v1609_v15, %s2318_s30 }
 0x7d0   :  { %1615 = vrot.lane.b32.xlu0 %v1610_v16, %s2318_s30 }
 0x7d2   :  { %v1034_v40 = vld [vmem:[%s3152_s8] sm:$0x3] }
 0x7d3   :  { %vm1035_vm11 = vcmp.ne.f32.partialorder %v1034_v40, 0.0 }
 0x7d4   :  { %v1036_v43 = vsel %vm1035_vm11, -1e+30, %v2309_v1 }
 0x7d5   :  { %v1096_v45 = vrot.slane %v1036_v43, %v2639_v14  ;;  %v1089_v32 = vrot.slane %v1036_v43, %v2540_v30 }
 0x838   :  { %v1264_v19 = vpop.permute.xlu1 %1263 }
 0x839   :  { %v1269_v3 = vsel %vm1078_vm10, %v1264_v19, 0.0 }
 0x83a   :  { %1270 = vadd.xlane.f32.xlu1 %v1269_v3  ;;  %v1266_v0 = vpop.permute.xlu0 %1265 }
 0x83b   :  { %v1272_v36 = vsel %vm1078_vm10, %v1266_v0, 0.0 }
 0x83c   :  { %v1439_v20 = vpop.permute.xlu1 %1438 }
 0x83d   :  { %v1444_v27 = vsel %vm1078_vm10, %v1439_v20, 0.0 }
 0x83e   :  { %1445 = vadd.xlane.f32.xlu0 %v1444_v27  ;;  %v1441_v31 = vpop.permute.xlu0 %1440 }
 0x83f   :  { %v1447_v21 = vsel %vm1078_vm10, %v1441_v31, 0.0 }
 0x840   :  { %v1614_v25 = vpop.permute.xlu1 %1613  ;;  %1448 = vadd.xlane.f32.xlu1 %v1447_v21 }
 0x841   :  { %v1619_v24 = vsel %vm1078_vm10, %v1614_v25, 0.0 }
 0x842   :  { %1620 = vadd.xlane.f32.xlu0 %v1619_v24  ;;  %v1616_v34 = vpop.permute.xlu0 %1615 }
 0x843   :  { %v1622_v35 = vsel %vm1078_vm10, %v1616_v34, 0.0 }
 0x844   :  { %1623 = vadd.xlane.f32.xlu1 %v1622_v35 }
 0x846   :  { %1273 = vadd.xlane.f32.xlu0 %v1272_v36 }
 0x855   :  { %1098 = vbcast.lane.b32.xlu1 %v1096_v45, 256 }
 0x85c   :  { %1091 = vbcast.lane.b32.xlu0 %v1089_v32, 256 }
 0x879   :  { %1080 = vadd.xlane.f32.xlu1 %v1079_v13 }
 0x87b   :  { %1083 = vadd.xlane.f32.xlu0 %v1082_v11 }
 0x8c7   :  { %v1271_v22 = vpop.xlane.xlu1 %1270 }
 0x8cb   :  { %v1446_v54 = vpop.xlane.xlu0 %1445 }
 0x8cd   :  { %v1449_v37 = vpop.xlane.xlu1 %1448 }
 0x8cf   :  { %v1621_v56 = vpop.xlane.xlu0 %1620 }
 0x8d1   :  { %v1624_v57 = vpop.xlane.xlu1 %1623 }
 0x8d3   :  { %v1274_v58 = vpop.xlane.xlu0 %1273 }
 0x8d5   :  { %v1099_v48 = vpop.permute.xlu1 %1098 }
 0x8d6   :  { %v1276_v51 = vadd.f32 %v1274_v58, %v1099_v48  ;;  %v1451_v62 = vadd.f32 %v1449_v37, %v1099_v48  ;;  %v1626_v26 = vadd.f32 %v1624_v57, %v1099_v48 }
 0x8d7   :  { %v1092_v59 = vpop.permute.xlu0 %1091 }
 0x8d8   :  { %v1450_v60 = vadd.f32 %v1446_v54, %v1092_v59  ;;  %v1275_v61 = vadd.f32 %v1271_v22, %v1092_v59  ;;  %v1625_v63 = vadd.f32 %v1621_v56, %v1092_v59 }
 0x8da   :  { %1455 = vperm.xlu1 %2207, %v1450_v60   ;;  %1280 = vperm.xlu0 %2208, %v1275_v61  }
 0x8de   :  { %1283 = vperm.xlu1 %2207, %v1276_v51   ;;  %1458 = vperm.xlu0 %2208, %v1451_v62  }
 0x8e2   :  { %1630 = vperm.xlu1 %2207, %v1625_v63   ;;  %1633 = vperm.xlu0 %2208, %v1626_v26  }
 0x906   :  { %v1081_v2 = vpop.xlane.xlu1 %1080 }
 0x907   :  { %v2875_v28 = vadd.f32 %v1092_v59, %v1081_v2 }
 0x908   :  { %v1084_v4 = vpop.xlane.xlu0 %1083 }
 0x909   :  { %v2877_v55 = vadd.f32 %v1099_v48, %v1084_v4  ;;  %1107 = vperm.xlu1 %2207, %v2875_v28  }
 0x90b   :  { %1110 = vperm.xlu0 %2208, %v2877_v55  }
 0x959   :  { %v1456_v5 = vpop.permute.xlu1 %1455  ;;  %v1281_v6 = vpop.permute.xlu0 %1280 }
 0x95a   :  { %v1463_v9 = vrot.slane %v1456_v5, %v2605_v42  ;;  %v1288_v18 = vrot.slane %v1281_v6, %v2605_v42 }
 0x95d   :  { %v1284_v7 = vpop.permute.xlu1 %1283  ;;  %v1459_v8 = vpop.permute.xlu0 %1458 }
 0x95e   :  { %v1292_v10 = vrot.slane %v1284_v7, %v2605_v42  ;;  %v1467_v12 = vrot.slane %v1459_v8, %v2605_v42 }
 0x960   :  { %v1293_v15 = vsel %vm235_vm4, %v1292_v10, %v1288_v18  ;;  %v1468_v23 = vsel %vm235_vm4, %v1467_v12, %v1463_v9 }
 0x961   :  { %v1631_v16 = vpop.permute.xlu1 %1630  ;;  %v1634_v19 = vpop.permute.xlu0 %1633  ;;  %v1295_v3 = vsel %vm208_vm3, %v1293_v15, -inf  ;;  %v1470_v0 = vsel %vm208_vm3, %v1468_v23, -inf }
 0x962   :  { %v1638_v20 = vrot.slane %v1631_v16, %v2605_v42  ;;  %v1642_v27 = vrot.slane %v1634_v19, %v2605_v42  ;;  %1296 = vmax.xlane.f32.xlu1 %v1295_v3  ;;  %1471 = vmax.xlane.f32.xlu0 %v1470_v0 }
 0x964   :  { %v1643_v31 = vsel %vm235_vm4, %v1642_v27, %v1638_v20 }
 0x965   :  { %v1645_v25 = vsel %vm208_vm3, %v1643_v31, -inf }
 0x966   :  { %1646 = vmax.xlane.f32.xlu0 %v1645_v25 }
 0x988   :  { %v1108_v21 = vpop.permute.xlu1 %1107 }
 0x989   :  { %v1115_v34 = vrot.slane %v1108_v21, %v2605_v42 }
 0x98a   :  { %v1111_v24 = vpop.permute.xlu0 %1110 }
 0x98b   :  { %v1119_v35 = vrot.slane %v1111_v24, %v2605_v42 }
 0x98d   :  { %v1120_v36 = vsel %vm235_vm4, %v1119_v35, %v1115_v34 }
 0x98e   :  { %v1122_v40 = vsel %vm208_vm3, %v1120_v36, -inf }
 0x98f   :  { %1123 = vmax.xlane.f32.xlu1 %v1122_v40 }
 0x9ef   :  { %v1297_v43 = vpop.xlane.xlu1 %1296  ;;  %v1472_v45 = vpop.xlane.xlu0 %1471 }
 0x9f0   :  { %v1302_v32 = vrot.slane %v1297_v43, %v2540_v30  ;;  %v1306_v38 = vrot.slane %v1297_v43, %v2639_v14  ;;  %v1477_v46 = vrot.slane %v1472_v45, %v2540_v30  ;;  %v1481_v47 = vrot.slane %v1472_v45, %v2639_v14 }
 0x9f2   :  { %v1309_v39 = vsub.f32 %v1275_v61, %v1302_v32  ;;  %v1310_v41 = vsub.f32 %v1276_v51, %v1306_v38  ;;  %v1485_v17 = vsub.f32 %v1451_v62, %v1481_v47  ;;  %v1484_v49 = vsub.f32 %v1450_v60, %v1477_v46 }
 0x9f3   :  { %v1647_v50 = vpop.xlane.xlu0 %1646 }
 0x9f4   :  { %v1311_v52 = vmul.f32 1.442695, %v1309_v39  ;;  %v1313_v53 = vmul.f32 1.442695, %v1310_v41  ;;  %v1652_v29 = vrot.slane %v1647_v50, %v2540_v30  ;;  %v1656_v44 = vrot.slane %v1647_v50, %v2639_v14 }
 0x9f5   :  { %v1488_v13 = vmul.f32 1.442695, %v1485_v17  ;;  %v1486_v11 = vmul.f32 1.442695, %v1484_v49 }
 0x9f6   :  { %2257 = vpow2.f32 %v1311_v52  ;;  %v1659_v22 = vsub.f32 %v1625_v63, %v1652_v29  ;;  %v1660_v54 = vsub.f32 %v1626_v26, %v1656_v44 }
 0x9f7   :  { %2259 = vpow2.f32 %v1313_v53 }
 0x9f8   :  { %2261 = vpow2.f32 %v1488_v13  ;;  %v1663_v37 = vmul.f32 1.442695, %v1660_v54  ;;  %v1661_v56 = vmul.f32 1.442695, %v1659_v22 }
 0x9f9   :  { %2263 = vpow2.f32 %v1486_v11 }
 0x9fa   :  { %2265 = vpow2.f32 %v1663_v37 }
 0x9fb   :  { %2267 = vpow2.f32 %v1661_v56 }
 0xa00   :  { %v2258_v57 = vpop.eup %2257 }
 0xa01   :  { %v2260_v58 = vpop.eup %2259  ;;  %1318 = vperm.xlu0 %2208, %v2258_v57  }
 0xa02   :  { %1321 = vperm.xlu1 %2207, %v2260_v58   ;;  %v2903_v59 = vpop.eup %2261 }
 0xa03   :  { %v2905_v60 = vpop.eup %2263 }
 0xa04   :  { %v2909_v61 = vpop.eup %2265 }
 0xa05   :  { %1496 = vperm.xlu0 %2208, %v2903_v59   ;;  %v2911_v48 = vpop.eup %2267 }
 0xa06   :  { %1493 = vperm.xlu1 %2207, %v2905_v60  }
 0xa09   :  { %1671 = vperm.xlu0 %2208, %v2909_v61  }
 0xa0a   :  { %1668 = vperm.xlu1 %2207, %v2911_v48  }
 0xa1c   :  { %v1124_v51 = vpop.xlane.xlu1 %1123 }
 0xa1d   :  { %v1129_v62 = vrot.slane %v1124_v51, %v2540_v30  ;;  %v1133_v63 = vrot.slane %v1124_v51, %v2639_v14 }
 0xa1f   :  { %v1136_v26 = vsub.f32 %v2875_v28, %v1129_v62  ;;  %v1137_v2 = vsub.f32 %v2877_v55, %v1133_v63 }
 0xa21   :  { %v1138_v4 = vmul.f32 1.442695, %v1136_v26  ;;  %v1140_v5 = vmul.f32 1.442695, %v1137_v2 }
 0xa23   :  { %2269 = vpow2.f32 %v1138_v4 }
 0xa24   :  { %2271 = vpow2.f32 %v1140_v5 }
 0xa2d   :  { %v2919_v6 = vpop.eup %2269 }
 0xa2e   :  { %v2921_v7 = vpop.eup %2271  ;;  %1145 = vperm.xlu1 %2207, %v2919_v6  }
 0xa2f   :  { %1148 = vperm.xlu0 %2208, %v2921_v7  }
 0xa80   :  { %v1319_v8 = vpop.permute.xlu0 %1318 }
 0xa81   :  { %v1322_v9 = vpop.permute.xlu1 %1321  ;;  %v1326_v18 = vrot.slane %v1319_v8, %v2605_v42  ;;  %v2096_v8 = vld [vmem:[%s3153_s12 + $0x30] sm:$0xff] }
 0xa82   :  { %v1330_v28 = vrot.slane %v1322_v9, %v2605_v42 }
 0xa84   :  { %v1497_v10 = vpop.permute.xlu0 %1496  ;;  %v1331_v55 = vsel %vm235_vm4, %v1330_v28, %v1326_v18 }
 0xa85   :  { %v1494_v12 = vpop.permute.xlu1 %1493  ;;  %v1505_v15 = vrot.slane %v1497_v10, %v2605_v42  ;;  %v1333_v23 = vsel %vm208_vm3, %v1331_v55, 0.0 }
 0xa86   :  { %v1501_v16 = vrot.slane %v1494_v12, %v2605_v42  ;;  %1334 = vadd.xlane.f32.xlu1 %v1333_v23 }
 0xa88   :  { %v1672_v19 = vpop.permute.xlu0 %1671  ;;  %v1506_v3 = vsel %vm235_vm4, %v1505_v15, %v1501_v16 }
 0xa89   :  { %v1669_v0 = vpop.permute.xlu1 %1668  ;;  %v1680_v20 = vrot.slane %v1672_v19, %v2605_v42  ;;  %v1508_v27 = vsel %vm208_vm3, %v1506_v3, 0.0  ;;  %v2099_v3 = vld [vmem:[%s3153_s12 + $0x18] sm:$0xff] }
 0xa8a   :  { %v1676_v31 = vrot.slane %v1669_v0, %v2605_v42  ;;  %1509 = vadd.xlane.f32.xlu0 %v1508_v27  ;;  %v2100_v0 = vld [vmem:[%s3153_s12 + $0x38] sm:$0xff] }
 0xa8c   :  { %v1681_v25 = vsel %vm235_vm4, %v1680_v20, %v1676_v31 }
 0xa8d   :  { %v1683_v21 = vsel %vm208_vm3, %v1681_v25, 0.0 }
 0xa8e   :  { %1684 = vadd.xlane.f32.xlu0 %v1683_v21 }
 0xaad   :  { %v1146_v24 = vpop.permute.xlu1 %1145 }
 0xaae   :  { %v1153_v34 = vrot.slane %v1146_v24, %v2605_v42  ;;  %v1149_v35 = vpop.permute.xlu0 %1148 }
 0xaaf   :  { %v1157_v36 = vrot.slane %v1149_v35, %v2605_v42 }
 0xab1   :  { %v1158_v40 = vsel %vm235_vm4, %v1157_v36, %v1153_v34 }
 0xab2   :  { %v1160_v43 = vsel %vm208_vm3, %v1158_v40, 0.0 }
 0xab3   :  { %1161 = vadd.xlane.f32.xlu1 %v1160_v43 }
 0xb13   :  { %v1335_v45 = vpop.xlane.xlu1 %1334 }
 0xb14   :  { %2273 = vrcp.f32 %v1335_v45 }
 0xb17   :  { %v1510_v32 = vpop.xlane.xlu0 %1509 }
 0xb18   :  { %2275 = vrcp.f32 %v1510_v32 }
 0xb1b   :  { %v1685_v38 = vpop.xlane.xlu0 %1684 }
 0xb1c   :  { %2277 = vrcp.f32 %v1685_v38 }
 0xb1e   :  { %v2274_v46 = vpop.eup %2273 }
 0xb1f   :  { %v1341_v47 = vrot.slane %v2274_v46, %v2540_v30  ;;  %v1345_v39 = vrot.slane %v2274_v46, %v2639_v14 }
 0xb21   :  { %v1348_v41 = vmul.f32 %v2258_v57, %v1341_v47  ;;  %v1349_v17 = vmul.f32 %v2260_v58, %v1345_v39 }
 0xb22   :  { %v2276_v49 = vpop.eup %2275 }
 0xb23   :  { %1354 = vperm.xlu0 %2208, %v1348_v41   ;;  %1359 = vperm.xlu1 %2207, %v1349_v17   ;;  %v1520_v50 = vrot.slane %v2276_v49, %v2639_v14  ;;  %v1516_v52 = vrot.slane %v2276_v49, %v2540_v30 }
 0xb25   :  { %v1524_v53 = vmul.f32 %v2903_v59, %v1520_v50  ;;  %v1523_v29 = vmul.f32 %v2905_v60, %v1516_v52 }
 0xb26   :  { %v2278_v44 = vpop.eup %2277 }
 0xb27   :  { %1534 = vperm.xlu0 %2208, %v1524_v53   ;;  %1529 = vperm.xlu1 %2207, %v1523_v29   ;;  %v1695_v13 = vrot.slane %v2278_v44, %v2639_v14  ;;  %v1691_v11 = vrot.slane %v2278_v44, %v2540_v30 }
 0xb29   :  { %v1699_v22 = vmul.f32 %v2909_v61, %v1695_v13  ;;  %v1698_v54 = vmul.f32 %v2911_v48, %v1691_v11 }
 0xb2b   :  { %1709 = vperm.xlu0 %2208, %v1699_v22   ;;  %1704 = vperm.xlu1 %2207, %v1698_v54  }
 0xb40   :  { %v1162_v37 = vpop.xlane.xlu1 %1161 }
 0xb41   :  { %2279 = vrcp.f32 %v1162_v37  ;;  %v2216_v37 = vld [vmem:[%s3108_s14 + $0x8] sm:$0xff]  }
 0xb4b   :  { %v2280_v56 = vpop.eup %2279 }
 0xb4c   :  { %v1172_v57 = vrot.slane %v2280_v56, %v2639_v14  ;;  %v1168_v58 = vrot.slane %v2280_v56, %v2540_v30  ;;  %v2092_v14 = vld [vmem:[%s3153_s12 + $0x28] sm:$0xff] }
 0xb4d   :  { %v2091_v30 = vld [vmem:[%s3153_s12 + $0x8] sm:$0xff] }
 0xb4e   :  { %v1176_v59 = vmul.f32 %v2921_v7, %v1172_v57  ;;  %v1175_v60 = vmul.f32 %v2919_v6, %v1168_v58  ;;  %v2095_v7 = vld [vmem:[%s3153_s12 + $0x10] sm:$0xff] }
 0xb50   :  { %v1351_v51 = vadd.f32 %v1349_v17, %v1176_v59  ;;  %1186 = vperm.xlu0 %2208, %v1176_v59   ;;  %v1350_v62 = vadd.f32 %v1348_v41, %v1175_v60  ;;  %1181 = vperm.xlu1 %2207, %v1175_v60  }
 0xb52   :  { %v1526_v61 = vadd.f32 %v1524_v53, %v1351_v51  ;;  %v1525_v63 = vadd.f32 %v1523_v29, %v1350_v62  ;;  %v2215_v53 = vld [vmem:[%s3108_s14] sm:$0xff]  }
 0xb53   :  { %2164 = vmatpush3.bf16.msra.mxu1 %v2215_v53 }
 0xb54   :  { %v2955_v48 = vadd.f32 %v1698_v54, %v1525_v63  ;;  %v2957_v26 = vadd.f32 %v1699_v22, %v1526_v61  ;;  %2165 = vmatprep.subr.bf16.mxu1 %v2309_v1 }
 0xb57   :  { %2166 = vmatpush3.bf16.msra.mxu1 %v2216_v37  ;;  %v2218_v37 = vld [vmem:[%s3112_s18 + $0x8] sm:$0xff]  }
 0xb58   :  { %2179 = vmatprep.subr.bf16.mxu1 %v2309_v1 }
 0xba2   :  { %v1360_v2 = vpop.permute.xlu1 %1359  ;;  %v1355_v4 = vpop.permute.xlu0 %1354 }
 0xba3   :  { %v1363_v5 = vmul.f32 %v2092_v14, %v1360_v2  ;;  %v1362_v6 = vmul.f32 %v2091_v30, %v1355_v4 }
 0xba5   :  { %v1371_v9 = vsel %vm1078_vm10, %v1363_v5, 0.0  ;;  %v1364_v18 = vsel %vm1078_vm10, %v1362_v6, 0.0 }
 0xba6   :  { %v1372_v28 = vrot.slane %v1371_v9, 4  ;;  %v1365_v10 = vrot.slane %v1364_v18, 4  ;;  %v1530_v55 = vpop.permute.xlu1 %1529  ;;  %v1535_v12 = vpop.permute.xlu0 %1534 }
 0xba7   :  { %v1537_v15 = vmul.f32 %v2095_v7, %v1530_v55  ;;  %v1538_v23 = vmul.f32 %v2096_v8, %v1535_v12  ;;  %v1041_v7 = vld [vmem:[%s3153_s12] sm:$0xff] }
 0xba8   :  { %v1373_v16 = vadd.f32 %v1372_v28, %v1371_v9  ;;  %v1366_v19 = vadd.f32 %v1365_v10, %v1364_v18  ;;  %v1042_v8 = vld [vmem:[%s3153_s12 + $0x20] sm:$0xff]  ;;  %s3154_s12 = smov 96  }
 0xba9   :  { %v1539_v20 = vsel %vm1078_vm10, %v1537_v15, 0.0  ;;  %v1546_v27 = vsel %vm1078_vm10, %v1538_v23, 0.0 }
 0xbaa   :  { %v1374_v31 = vrot.slane %v1373_v16, 2  ;;  %v1367_v25 = vrot.slane %v1366_v19, 2  ;;  %v1540_v21 = vrot.slane %v1539_v20, 4  ;;  %v1547_v24 = vrot.slane %v1546_v27, 4  ;;  %v1705_v34 = vpop.permute.xlu1 %1704  ;;  %v1710_v35 = vpop.permute.xlu0 %1709 }
 0xbab   :  { %v1712_v36 = vmul.f32 %v2099_v3, %v1705_v34  ;;  %v1713_v40 = vmul.f32 %v2100_v0, %v1710_v35 }
 0xbac   :  { %v1375_v43 = vadd.f32 %v1374_v31, %v1373_v16  ;;  %v1368_v45 = vadd.f32 %v1367_v25, %v1366_v19  ;;  %v1541_v32 = vadd.f32 %v1540_v21, %v1539_v20  ;;  %v1548_v38 = vadd.f32 %v1547_v24, %v1546_v27 }
 0xbad   :  { %v1714_v46 = vsel %vm1078_vm10, %v1712_v36, 0.0  ;;  %v1721_v47 = vsel %vm1078_vm10, %v1713_v40, 0.0 }
 0xbae   :  { %v1376_v39 = vrot.slane %v1375_v43, 1  ;;  %v1369_v41 = vrot.slane %v1368_v45, 1  ;;  %v1542_v17 = vrot.slane %v1541_v32, 2  ;;  %v1549_v49 = vrot.slane %v1548_v38, 2 }
 0xbaf   :  { %v1715_v50 = vrot.slane %v1714_v46, 4  ;;  %v1722_v52 = vrot.slane %v1721_v47, 4 }
 0xbb0   :  { %v1377_v29 = vadd.f32 %v1376_v39, %v1375_v43  ;;  %v1370_v44 = vadd.f32 %v1369_v41, %v1368_v45  ;;  %v1543_v13 = vadd.f32 %v1542_v17, %v1541_v32  ;;  %v1550_v11 = vadd.f32 %v1549_v49, %v1548_v38  ;;  %v2101_v32 = vld [vmem:[%s3109_s15] ss:$0 sm:$0xff] }
 0xbb1   :  { %v1716_v22 = vadd.f32 %v1715_v50, %v1714_v46  ;;  %v1723_v54 = vadd.f32 %v1722_v52, %v1721_v47  ;;  %v154_v50 = vld [vmem:[#allocation2] sm:$0x3]  ;;  %v1735_v52 = vmul.f32 0.25, %v2955_v48 }
 0xbb2   :  { %v1544_v56 = vrot.slane %v1543_v13, 1  ;;  %v1551_v57 = vrot.slane %v1550_v11, 1  ;;  %v1380_v58 = vsel %vm235_vm4, %v1377_v29, %v1370_v44  ;;  %v2217_v48 = vld [vmem:[%s3112_s18] sm:$0xff]  }
 0xbb3   :  { %v1717_v59 = vrot.slane %v1716_v22, 2  ;;  %v1724_v60 = vrot.slane %v1723_v54, 2  ;;  %1381 = vrot.lane.b32.xlu1 %v1380_v58, %s2311_s6  ;;  %2172 = vmatpush3.bf16.msra.mxu0 %v2217_v48 }
 0xbb4   :  { %v1545_v51 = vadd.f32 %v1544_v56, %v1543_v13  ;;  %v1552_v62 = vadd.f32 %v1551_v57, %v1550_v11  ;;  %2173 = vmatprep.subr.bf16.mxu0 %v2309_v1  ;;  %v2219_v56 = vld [vmem:[%s3114_s20] sm:$0xff]  }
 0xbb5   :  { %v1718_v61 = vadd.f32 %v1717_v59, %v1716_v22  ;;  %v1725_v63 = vadd.f32 %v1724_v60, %v1723_v54  ;;  %v161_v22 = vld [vmem:[#allocation2] sm:$0x3]  ;;  %v1736_v54 = vmul.f32 0.25, %v2957_v26  ;;  %v2220_v26 = vld [vmem:[%s3114_s20 + $0x8] sm:$0xff]  }
 0xbb6   :  { %v1555_v14 = vsel %vm235_vm4, %v1552_v62, %v1545_v51 }
 0xbb7   :  { %v1719_v30 = vrot.slane %v1718_v61, 1  ;;  %v1726_v2 = vrot.slane %v1725_v63, 1  ;;  %1556 = vrot.lane.b32.xlu0 %v1555_v14, %s2312_s3  ;;  %2174 = vmatpush3.bf16.msra.mxu0 %v2218_v37 }
 0xbb9   :  { %v1720_v4 = vadd.f32 %v1719_v30, %v1718_v61  ;;  %v1727_v5 = vadd.f32 %v1726_v2, %v1725_v63  ;;  %v2105_v2 = vld [vmem:[%s3110_s16] ss:$0 sm:$0xff] }
 0xbbb   :  { %v1730_v6 = vsel %vm235_vm4, %v1727_v5, %v1720_v4  ;;  %v2106_v5 = vld [vmem:[%s3111_s17] ss:$0 sm:$0xff] }
 0xbbc   :  { %1731 = vrot.lane.b32.xlu1 %v1730_v6, %s2313_s10 }
 0xbcf   :  { %v1182_v9 = vpop.permute.xlu1 %1181  ;;  %v1187_v18 = vpop.permute.xlu0 %1186 }
 0xbd0   :  { %v1189_v28 = vmul.f32 %v1182_v9, %v1041_v7  ;;  %v1190_v10 = vmul.f32 %v1187_v18, %v1042_v8  ;;  %v2222_v9 = vld [vmem:[%s3114_s20 + $0x18] sm:$0xff]   ;;  %v2107_v18 = vld [vmem:[%s3113_s19] ss:$0 sm:$0xff]  ;;  %s2324_s19 = smov [#allocation6]  }
 0xbd2   :  { %v1191_v55 = vsel %vm1078_vm10, %v1189_v28, 0.0  ;;  %v1198_v12 = vsel %vm1078_vm10, %v1190_v10, 0.0 }
 0xbd3   :  { %v1192_v15 = vrot.slane %v1191_v55, 4  ;;  %v1199_v23 = vrot.slane %v1198_v12, 4 }
 0xbd5   :  { %v1193_v16 = vadd.f32 %v1192_v15, %v1191_v55  ;;  %v1200_v19 = vadd.f32 %v1199_v23, %v1198_v12 }
 0xbd7   :  { %v1194_v3 = vrot.slane %v1193_v16, 2  ;;  %v1201_v0 = vrot.slane %v1200_v19, 2 }
 0xbd9   :  { %v1195_v20 = vadd.f32 %v1194_v3, %v1193_v16  ;;  %v1202_v27 = vadd.f32 %v1201_v0, %v1200_v19 }
 0xbdb   :  { %v1196_v31 = vrot.slane %v1195_v20, 1  ;;  %v1203_v25 = vrot.slane %v1202_v27, 1 }
 0xbdd   :  { %v1197_v21 = vadd.f32 %v1196_v31, %v1195_v20  ;;  %v1204_v24 = vadd.f32 %v1203_v25, %v1202_v27 }
 0xbdf   :  { %v1207_v34 = vsel %vm235_vm4, %v1204_v24, %v1197_v21 }
 0xbe0   :  { %1209 = vst.msk [vmem:[#allocation5] sm:$0x3] %vm208_vm3, %v1207_v34 }
 0xc25   :  { %v1382_v35 = vpop.permute.xlu1 %1381 }
 0xc26   :  { %1384 = vst.msk [vmem:[#allocation5] sm:$0x3] %vm505_vm6, %v1382_v35 }
 0xc29   :  { %v1557_v36 = vpop.permute.xlu0 %1556 }
 0xc2a   :  { %1559 = vst.msk [vmem:[#allocation5] sm:$0x3] %vm685_vm7, %v1557_v36 }
 0xc2e   :  { %v1732_v40 = vpop.permute.xlu1 %1731 }
 0xc2f   :  { %1734 = vst.msk [vmem:[#allocation5] sm:$0x3] %vm865_vm8, %v1732_v40 }
 0xc36   :  { %v1756_v43 = vld [vmem:[#allocation5] sm:$0x3] }
 0xc37   :  { %v1757_v45 = vpack.c.bf16 %v1756_v43, %v1756_v43 }
 0xc39   :  { %2168 = vmatmul.mubr.msk.bf16.vlgmr.msra.gmra.mrb[4].mxu1 %vm108_vm1, %v1757_v45 }
 0xc3a   :  { %2187 = vmatprep.mubr.msk.bf16.mxu1 %vm2310_vm0, %v2309_v1  ;;  %2180 = vmatpush3.bf16.msra.mxu1 %v2219_v56 }
 0xc3b   :  { %2181 = vmatprep.subr.bf16.mxu1 %v2309_v1 }
 0xc3e   :  { %2182 = vmatpush3.bf16.msra.mxu1 %v2220_v26 }
 0xc3f   :  { %2183 = vmatprep.subr.bf16.mxu1 %v2309_v1 }
 0xd0c   :  { %v1818_v38 = vpop.f32.mrb[4].mxu1 }
 0xd0d   :  { %v1819_v46 = vadd.f32 %v2101_v32, %v1818_v38  ;;  %v2169_v47 = vpop.f32.mrb[5].mxu1 }
 0xd0e   :  { %v1821_v39 = vpop.f32.mrb[6].mxu1 }
 0xd0f   :  { %v1824_v41 = vadd.f32 %v1819_v46, %v2818_v33  ;;  %v2170_v17 = vpop.f32.mrb[7].mxu1 }
 0xd11   :  { %v1825_v49 = vsel %vm159_vm9, %v1824_v41, 0.0 }
 0xd12   :  { %1826 = vadd.xlane.f32.xlu0 %v1825_v49 }
 0xd28   :  { %156 = vrot.lane.b32.xlu0 %v154_v50, %s3154_s12 }
 0xd2c   :  { %1740 = vperm.xlu0 %2208, %v1735_v52  }
 0xd9f   :  { %v1827_v53 = vpop.xlane.xlu0 %1826 }
 0xda0   :  { %v1828_v29 = vmul.f32 0.03125, %v1827_v53 }
 0xda2   :  { %v1829_v44 = vsub.f32 %v1824_v41, %v1828_v29 }
 0xda3   :  { %v157_v13 = vpop.permute.xlu0 %156 }
 0xda4   :  { %160 = vst.msk [vmem:[%s3119_s25] sm:$0x3] %vm159_vm9, %v157_v13  ;;  %v1830_v33 = vmul.f32 %v1829_v44, %v1829_v44 }
 0xda6   :  { %v1831_v11 = vsel %vm159_vm9, %v1830_v33, 0.0 }
 0xda7   :  { %1832 = vadd.xlane.f32.xlu1 %v1831_v11 }
 0xdab   :  { %v1741_v51 = vpop.permute.xlu0 %1740 }
 0xdac   :  { %v1748_v61 = vrot.slane %v1741_v51, %v2605_v42 }
 0xdb8   :  { %163 = vrot.lane.b32.xlu1 %v161_v22, %s3155_s13 }
 0xdbc   :  { %1743 = vperm.xlu1 %2207, %v1736_v54  }
 0xe34   :  { %v1833_v57 = vpop.xlane.xlu1 %1832 }
 0xe35   :  { %v1834_v58 = vmul.f32 0.03125, %v1833_v57 }
 0xe37   :  { %v1835_v59 = vadd.f32 1e-05, %v1834_v58 }
 0xe38   :  { %v164_v60 = vpop.permute.xlu1 %163 }
 0xe39   :  { %2281 = vrsqrt.f32 %v1835_v59  ;;  %166 = vst.msk [vmem:[%s3120_s26] sm:$0x3] %vm159_vm9, %v164_v60 }
 0xe3c   :  { %v1744_v62 = vpop.permute.xlu1 %1743 }
 0xe3d   :  { %v1752_v63 = vrot.slane %v1744_v62, %v2605_v42  ;;  %v2221_v42 = vld [vmem:[%s3114_s20 + $0x10] sm:$0xff]   ;;  %s2049_s20 = sshll.u32 %s2324_s19, 4  ;;  %s2050_s20 = int_to_ptr.vmem [resolvable:$true] %s2049_s20 }
 0xe3e   :  { %2184 = vmatpush3.bf16.msra.mxu1 %v2221_v42  ;;  %p2290_p1 = scmp.lt.s32.totalorder %s2050_s20, %s2050_s20 }
 0xe3f   :  { %v1753_v14 = vsel %vm235_vm4, %v1752_v63, %v1748_v61  ;;  %2185 = vmatprep.subr.bf16.mxu1 %v2309_v1  ;;  %v2111_v1 = vld [vmem:[%s3115_s21] ss:$0 sm:$0xff]  ;;  %s2285_s21 = scalar_lea.vmem %s2050_s20, 32 }
 0xe40   :  { %1755 = vst.msk [vmem:[#allocation6] sm:$0x3] %vm208_vm3, %v1753_v14  ;;  %p2286_p0 = scmp.ne.s32.totalorder %s2050_s20, %s2285_s21  ;;  %p2291_p2 = scmp.lt.s32.totalorder %s2285_s21, %s2285_s21 }
 0xe42   :  { %2186 = vmatpush3.bf16.msra.mxu1 %v2222_v9  ;;  %p2292_p3 = por %p2291_p2, %p2290_p1 }
 0xe43   :  { %v2282_v30 = vpop.eup %2281 }
 0xe44   :  { %v1837_v4 = vmul.f32 %v2282_v30, %v1829_v44  ;;  %p2293_p4 = pnand %p2292_p3, %p2286_p0 }
 0xe46   :  { %v1845_v6 = vmul.f32 %v2105_v2, %v1837_v4 }
 0xe48   :  { %v1853_v7 = vadd.f32 %v2106_v5, %v1845_v6 }
 0xe4a   :  { %v1854_v8 = vpack.c.bf16 %v1853_v7, %v1853_v7 }
 0xe4c   :  { %2176 = vmatmul.mubr.msk.bf16.vlgmr.msra.gmra.mrb[8].mxu0 %vm108_vm1, %v1854_v8 }
 0xf1f   :  { %v1915_v28 = vpop.f32.mrb[8].mxu0 }
 0xf20   :  { %v1916_v10 = vadd.f32 %v2107_v18, %v1915_v28  ;;  %v2177_v55 = vpop.f32.mrb[9].mxu0 }
 0xf21   :  { %v1918_v12 = vpop.f32.mrb[10].mxu0 }
 0xf22   :  { %v1921_v15 = vmax.f32 %v1916_v10, 0.0  ;;  %v2178_v23 = vpop.f32.mrb[11].mxu0 }
 0xf24   :  { %v1922_v16 = vpack.c.bf16 %v1921_v15, %v1921_v15 }
 0xf26   :  { %2188 = vmatmul.mubr.msk.bf16.vlgmr.msra.gmra.mrb[8].mxu1 %vm1962_vm12, %v1922_v16 }
 0xff9   :  { %v2000_v19 = vpop.f32.mrb[8].mxu1 }
 0xffa   :  { %v2001_v3 = vadd.f32 %v2111_v1, %v2000_v19  ;;  %v2189_v0 = vpop.f32.mrb[9].mxu1 }
 0xffb   :  { %v2003_v20 = vpop.f32.mrb[10].mxu1 }
 0xffc   :  { %v2006_v27 = vadd.f32 %v2001_v3, %v1853_v7  ;;  %v2190_v31 = vpop.f32.mrb[11].mxu1 }
 0xffe   :  { %v2007_v25 = vsel %vm159_vm9, %v2006_v27, 0.0 }
 0xfff   :  { %2008 = vadd.xlane.f32.xlu0 %v2007_v25 }
0x108c   :  { %v2009_v21 = vpop.xlane.xlu0 %2008 }
0x108d   :  { %v2010_v24 = vmul.f32 0.03125, %v2009_v21 }
0x108f   :  { %v2011_v34 = vsub.f32 %v2006_v27, %v2010_v24 }
0x1091   :  { %v2012_v35 = vmul.f32 %v2011_v34, %v2011_v34 }
0x1093   :  { %v2013_v36 = vsel %vm159_vm9, %v2012_v35, 0.0 }
0x1094   :  { %2014 = vadd.xlane.f32.xlu1 %v2013_v36 }
0x1095   :  { %2296 = shalt.err (!%p2293_p4)
}
0x1096   :  { %s2297_s4 = scalar_lea.hbm %s3121_s27, 32 }
0x1097   :  { %p2298_p5 = scmp.ne.s32.totalorder %s3121_s27, %s2297_s4  ;;  %p2301_p6 = scmp.lt.u32.totalorder %s2297_s4, %s3121_s27 }
0x1099   :  { %p2303_p7 = pnand %p2301_p6, %p2298_p5 }
0x109b   :  { %2306 = shalt.err (!%p2303_p7)
}
0x109c   :  { %2052 = dma.vmem_to_hbm [thread:$0]  %s2050_s20, 32, %s3121_s27, [#allocation7]   ;;  %v2117_v38 = vld [vmem:[%s3116_s22] ss:$0 sm:$0xff] }
0x109d   :  { %v2118_v47 = vld [vmem:[%s3117_s23] ss:$0 sm:$0xff] }
0x1121   :  { %v2015_v40 = vpop.xlane.xlu1 %2014 }
0x1122   :  { %v2016_v43 = vmul.f32 0.03125, %v2015_v40 }
0x1124   :  { %v2017_v45 = vadd.f32 1e-05, %v2016_v43 }
0x1126   :  { %2283 = vrsqrt.f32 %v2017_v45 }
0x1130   :  { %v2284_v32 = vpop.eup %2283 }
0x1131   :  { %v2019_v46 = vmul.f32 %v2284_v32, %v2011_v34 }
0x1133   :  { %v2027_v39 = vmul.f32 %v2117_v38, %v2019_v46 }
0x1135   :  { %v2035_v41 = vadd.f32 %v2118_v47, %v2027_v39 }
0x1137   :  { %2036 = vst.msk [vmem:[%s3118_s24] sm:$0x3] %vm159_vm9, %v2035_v41 }
0x1138   :  { %2307 = dma.done.wait [#allocation7], 32  }
0x1139   :  { %2308 = vsyncadd [#allocation7], 4294967264 }
0x113a   :  { %2062 = vsyncpa [#allocation7], 1 }

</bundles_post_ra>
